<compile_context>
chip_gen: v6e
topology: v6e:2x2x1
jax: 0.10.0
libtpu: 0.0.40
codegen_flags: <defaults>
</compile_context>

<pallas_src>
import jax
import jax.numpy as jnp
from jax.experimental import pallas as pl
from jax.experimental.pallas import tpu as pltpu

# Module constants (from BiochemicalDiffusion.__init__)
F_CONST = 1.0
B_CONST = 0.1
R_CONST = 0.01


def biochem_kernel(a_ref, xk_ref, xi_ref, o_ref, acc_ref):
    """One (row-tile i, contraction-tile k) step.

    acc_ref accumulates y = A @ x over the k axis; the k == last epilogue
    computes out = f - b*x_i - r * sum_d y[i,d] * x[i,d] (broadcast over dim).
    """
    k = pl.program_id(1)

    @pl.when(k == 0)
    def _():
        acc_ref[...] = jnp.zeros_like(acc_ref)

    # A is streamed as bf16 (adjacency is exactly 0/1, so the cast is lossless);
    # accumulate the matmul in f32.
    a = a_ref[...].astype(jnp.float32)                       # (TM, TK)
    acc_ref[...] += jnp.dot(a, xk_ref[...],                  # (TK, dim)
                            preferred_element_type=jnp.float32)

    @pl.when(k == pl.num_programs(1) - 1)
    def _():
        xi = xi_ref[...]                                     # (TM, dim) f32
        # diag_i = r * sum_d (A @ x)[i, d] * x[i, d]   -> (TM, 1)
        diag = R_CONST * jnp.sum(acc_ref[...] * xi, axis=-1, keepdims=True)
        o_ref[...] = (F_CONST - B_CONST * xi - diag).astype(o_ref.dtype)


def biochemical_diffusion(A, x, *, tm=512, tk=512):
    """dx/dt for BiochemicalDiffusion. A: (n, n), x: (n, dim) -> (n, dim).

    Default tiles (512, 512) fit comfortably in v5e's 16 MiB / v7x's 32 MiB
    scoped VMEM with double buffering; bump tm to 1024 on v6e if desired.
    """
    n, dim = x.shape
    assert A.shape == (n, n)

    tm = min(tm, n)
    tk = min(tk, n)
    assert n % tm == 0 and n % tk == 0, "n must be divisible by the tile sizes"
    if tm < n:
        assert tm % 8 == 0
    if tk < n:
        assert tk % 128 == 0
    # TODO(synk): if dim is not a multiple of 128 (and < 128), pad it in the
    # wrapper for lane-dense stores; here dim=128 is already lane-dense.

    # 0/1 adjacency is exact in bf16 -> halves the dominant HBM traffic.
    a_bf16 = A.astype(jnp.bfloat16)

    grid = (n // tm, n // tk)
    flops = 2 * n * n * dim + 5 * n * dim
    bytes_accessed = n * n * 2 + 2 * n * dim * 4 + n * dim * 4

    return pl.pallas_call(
        biochem_kernel,
        out_shape=jax.ShapeDtypeStruct((n, dim), x.dtype),
        grid=grid,
        in_specs=[
            pl.BlockSpec((tm, tk), lambda i, k: (i, k)),    # A tile (streamed)
            pl.BlockSpec((tk, dim), lambda i, k: (k, 0)),   # x rows for A @ x
            pl.BlockSpec((tm, dim), lambda i, k: (i, 0)),   # x rows for epilogue
        ],
        out_specs=pl.BlockSpec((tm, dim), lambda i, k: (i, 0)),
        scratch_shapes=[pltpu.VMEM((tm, dim), jnp.float32)],  # y = A@x accumulator
        compiler_params=pltpu.CompilerParams(
            dimension_semantics=("parallel", "arbitrary"),
            vmem_limit_bytes=32 * 1024 * 1024,
        ),
        cost_estimate=pl.CostEstimate(
            flops=flops, transcendentals=0, bytes_accessed=bytes_accessed),
    )(a_bf16, x, x)


def _reference(A, x):
    # Pure-JAX mirror of the PyTorch forward (full-precision matmuls).
    f = F_CONST - B_CONST * x
    g = jnp.dot(x, x.T, precision=jax.lax.Precision.HIGHEST)
    outer = jnp.dot(A, R_CONST * g, precision=jax.lax.Precision.HIGHEST)
    d = jnp.diag(outer).reshape(-1, 1)
    return f - d


if __name__ == "__main__":
    n, dim = 512, 128  # small shapes; dim=128 keeps the output lane-dense
    key = jax.random.PRNGKey(0)
    k_a, k_x = jax.random.split(key)

    # Deterministic synthetic adjacency (module's global `A`) and state x.
    A = (jax.random.uniform(k_a, (n, n), dtype=jnp.float32) < 0.3).astype(jnp.float32)
    # Quantize x to multiples of 1/8 so the check is insensitive to MXU
    # precision paths (values exact in bf16 and f32); kernel takes arbitrary f32.
    x = jnp.round(jax.random.uniform(k_x, (n, dim), dtype=jnp.float32) * 8.0) / 8.0

    t = 0.0  # autonomous system: t is unused by the forward pass
    out = biochemical_diffusion(A, x, tm=256, tk=256)  # exercises a 2x2 grid
    out = jax.block_until_ready(out)

    ref = _reference(A, x)
    assert out.shape == (n, dim)
    assert jnp.allclose(out, ref, rtol=1e-4, atol=1e-3), float(jnp.max(jnp.abs(out - ref)))

    print("KERNEL_OK")
</pallas_src>

<mosaic_0001>
module attributes {stable_mosaic.version = 11 : i64} {
  func.func @biochem_kernel(%arg0: i32, %arg1: i32, %arg2: memref<256x256xbf16, #tpu.memory_space<vmem>>, %arg3: memref<256x128xf32, #tpu.memory_space<vmem>>, %arg4: memref<256x128xf32, #tpu.memory_space<vmem>>, %arg5: memref<256x128xf32, #tpu.memory_space<vmem>>, %arg6: memref<256x128xf32, #tpu.memory_space<vmem>>) attributes {dimension_semantics = [#tpu.dimension_semantics<parallel>, #tpu.dimension_semantics<arbitrary>], iteration_bounds = array<i64: 2, 2>, scalar_prefetch = 0 : i64, scratch_operands = 1 : i64, tpu.core_type = #tpu.core_type<tc>, window_params = [{transform_indices = @transform_0, window_bounds = array<i64: 256, 256>}, {transform_indices = @transform_1, window_bounds = array<i64: 256, 128>}, {transform_indices = @transform_2, window_bounds = array<i64: 256, 128>}, {transform_indices = @transform_3, window_bounds = array<i64: 256, 128>}]} {
    %c0_i32 = arith.constant 0 : i32
    %0 = arith.cmpi eq, %arg1, %c0_i32 : i32
    %1 = arith.extui %0 : i1 to i32
    %c0_i32_0 = arith.constant 0 : i32
    %2 = arith.cmpi ne, %1, %c0_i32_0 : i32
    scf.if %2 {
      %cst_9 = arith.constant 0.000000e+00 : f32
      %13 = vector.broadcast %cst_9 : f32 to vector<256x128xf32>
      %c0_10 = arith.constant 0 : index
      %c0_11 = arith.constant 0 : index
      %14 = vector.load %arg6[%c0_10, %c0_11] : memref<256x128xf32, #tpu.memory_space<vmem>>, vector<256x128xf32>
      tpu.vector_store %arg6[%c0_10, %c0_11], %13 {strides = array<i32>} : memref<256x128xf32, #tpu.memory_space<vmem>>, vector<256x128xf32>,
    } else {
    }
    %c0 = arith.constant 0 : index
    %c0_1 = arith.constant 0 : index
    %3 = vector.load %arg2[%c0, %c0_1] : memref<256x256xbf16, #tpu.memory_space<vmem>>, vector<256x256xbf16>
    %4 = arith.extf %3 : vector<256x256xbf16> to vector<256x256xf32>
    %c0_2 = arith.constant 0 : index
    %c0_3 = arith.constant 0 : index
    %5 = vector.load %arg6[%c0_2, %c0_3] : memref<256x128xf32, #tpu.memory_space<vmem>>, vector<256x128xf32>
    %c0_4 = arith.constant 0 : index
    %c0_5 = arith.constant 0 : index
    %6 = vector.load %arg3[%c0_4, %c0_5] : memref<256x128xf32, #tpu.memory_space<vmem>>, vector<256x128xf32>
    %cst = arith.constant dense<0.000000e+00> : vector<256x128xf32>
    %7 = tpu.matmul %4, %6, %cst {dimension_numbers = #tpu.dot_dimension_numbers<[1], [0], [0], [1], [0, 0, 1, 1], [], []>} : vector<256x256xf32>, vector<256x128xf32>, vector<256x128xf32> -> vector<256x128xf32>
    %8 = arith.addf %5, %7 : vector<256x128xf32>
    %c0_6 = arith.constant 0 : index
    %c0_7 = arith.constant 0 : index
    %9 = vector.load %arg6[%c0_6, %c0_7] : memref<256x128xf32, #tpu.memory_space<vmem>>, vector<256x128xf32>
    tpu.vector_store %arg6[%c0_6, %c0_7], %8 {strides = array<i32>} : memref<256x128xf32, #tpu.memory_space<vmem>>, vector<256x128xf32>,
    %c1_i32 = arith.constant 1 : i32
    %10 = arith.cmpi eq, %arg1, %c1_i32 : i32
    %11 = arith.extui %10 : i1 to i32
    %c0_i32_8 = arith.constant 0 : i32
    %12 = arith.cmpi ne, %11, %c0_i32_8 : i32
    scf.if %12 {
      %c0_9 = arith.constant 0 : index
      %c0_10 = arith.constant 0 : index
      %13 = vector.load %arg4[%c0_9, %c0_10] : memref<256x128xf32, #tpu.memory_space<vmem>>, vector<256x128xf32>
      %c0_11 = arith.constant 0 : index
      %c0_12 = arith.constant 0 : index
      %14 = vector.load %arg6[%c0_11, %c0_12] : memref<256x128xf32, #tpu.memory_space<vmem>>, vector<256x128xf32>
      %15 = arith.mulf %14, %13 : vector<256x128xf32>
      %cst_13 = arith.constant dense<0.000000e+00> : vector<256xf32>
      %16 = vector.multi_reduction <add>, %15, %cst_13 [1] : vector<256x128xf32> to vector<256xf32>
      %17 = vector.shape_cast %16 : vector<256xf32> to vector<256x1xf32>
      %cst_14 = arith.constant 0.00999999977 : f32
      %18 = vector.broadcast %cst_14 : f32 to vector<256x1xf32>
      %19 = arith.mulf %18, %17 : vector<256x1xf32>
      %cst_15 = arith.constant 1.000000e-01 : f32
      %20 = vector.broadcast %cst_15 : f32 to vector<256x128xf32>
      %21 = arith.mulf %20, %13 : vector<256x128xf32>
      %cst_16 = arith.constant 1.000000e+00 : f32
      %22 = vector.broadcast %cst_16 : f32 to vector<256x128xf32>
      %23 = arith.subf %22, %21 : vector<256x128xf32>
      %24 = vector.broadcast %19 : vector<256x1xf32> to vector<256x128xf32>
      %25 = arith.subf %23, %24 : vector<256x128xf32>
      %c0_17 = arith.constant 0 : index
      %c0_18 = arith.constant 0 : index
      %26 = vector.load %arg5[%c0_17, %c0_18] : memref<256x128xf32, #tpu.memory_space<vmem>>, vector<256x128xf32>
      tpu.vector_store %arg5[%c0_17, %c0_18], %25 {strides = array<i32>} : memref<256x128xf32, #tpu.memory_space<vmem>>, vector<256x128xf32>,
    } else {
    }
    return
  }
  func.func @transform_0(%arg0: i32, %arg1: i32) -> (i32, i32) {
    %c0_i32 = arith.constant 0 : i32
    return %arg0, %arg1 : i32, i32
  }
  func.func @transform_1(%arg0: i32, %arg1: i32) -> (i32, i32) {
    %c0_i32 = arith.constant 0 : i32
    %c0_i32_0 = arith.constant 0 : i32
    return %arg1, %c0_i32 : i32, i32
  }
  func.func @transform_2(%arg0: i32, %arg1: i32) -> (i32, i32) {
    %c0_i32 = arith.constant 0 : i32
    %c0_i32_0 = arith.constant 0 : i32
    return %arg0, %c0_i32 : i32, i32
  }
  func.func @transform_3(%arg0: i32, %arg1: i32) -> (i32, i32) {
    %c0_i32 = arith.constant 0 : i32
    %c0_i32_0 = arith.constant 0 : i32
    return %arg0, %c0_i32 : i32, i32
  }
}

</mosaic_0001>

<bundles_post_ra>
// kernel: tpu_custom_call.1
= control target key start
LH: loop header
LB: loop body
LE: loop exit
PB: predicated region body
PF: predicated region fallthrough
CT: control target
= control target key end

     0   :  { %s2428_s0 = inlined_call_operand.hbm [shape: bf16[512,512], index: 0, kind: input, shape index: {}]   ;;  %s2429_s1 = inlined_call_operand.hbm [shape: f32[512,128], index: 1, kind: input, shape index: {}]   ;;  %s2430_s2 = inlined_call_operand.hbm [shape: f32[512,128], index: 2, kind: input, shape index: {}]   ;;  %s2431_s3 = inlined_call_operand.hbm [shape: f32[512,128], index: 3, kind: output, shape index: {}]  }
   0x1   :  { %2448 = sst [smem:[#allocation23_spill]] %s2428_s0 }
   0x2   :  { %2449 = sst [smem:[#allocation24_spill]] %s2429_s1 }
   0x3   :  { %2450 = sst [smem:[#allocation25_spill]] %s2431_s3 }
   0x4   :  { %8 = vsyncpa [#allocation4], 0 }
   0x5   :  { %10 = vsyncpa [#allocation4 + $0x1], 0 }
   0x6   :  { %11 = vsyncpa [#allocation7], 0 }
   0x7   :  { %13 = vsyncpa [#allocation7 + $0x1], 0 }
   0x8   :  { %14 = vsyncpa [#allocation5], 0 }
   0x9   :  { %16 = vsyncpa [#allocation5 + $0x1], 0  ;;  %s1748_s12 = smov 0   ;;  %s1750_s13 = smov 0  }
   0xa   :  { %s1752_s14 = smov 0   ;;  %s1754_s15 = smov 0  }
   0xb   :  { %s1756_s16 = smov 0   ;;  %s1758_s17 = smov 0  }
   0xc   :  { %s1760_s18 = smov 0   ;;  %s1762_s19 = smov 0  }
   0xd   :  { %s1764_s20 = smov 0   ;;  %s1766_s21 = smov 0  }
   0xe   :  { %s1768_s22 = smov 0   ;;  %s1770_s23 = smov 0  }
   0xf   :  { %s1772_s24 = smov 0   ;;  %s1774_s25 = smov 0  }
  0x10 LB: > { %2451 = sst [smem:[#allocation14_spill]] %s1683_s17  ;;  %s1819_s26 = sadd.s32 4294967295, %s1715_s25   ;;  %s1715_s25 = sphi %s1774_s25, %s22_s25   ;;  %s1711_s24 = sphi %s1772_s24, %s2497_s24   ;;  %s1707_s23 = sphi %s1770_s23, %s2505_s23   ;;  %s1703_s22 = sphi %s1768_s22, %s2495_s22   ;;  %s1699_s21 = sphi %s1766_s21, %s2494_s21   ;;  %s1695_s20 = sphi %s1764_s20, %s2493_s20   ;;  %s1691_s19 = sphi %s1762_s19, %s2504_s19   ;;  %s1687_s18 = sphi %s1760_s18, %s2503_s18   ;;  %s1683_s17 = sphi %s1758_s17, %s2491_s17   ;;  %s1679_s16 = sphi %s1756_s16, %s2502_s16   ;;  %s1675_s15 = sphi %s1754_s15, %s2501_s15   ;;  %s1671_s14 = sphi %s1752_s14, %s2500_s14   ;;  %s1667_s13 = sphi %s1750_s13, %s2499_s13   ;;  %s1663_s12 = sphi %s1748_s12, %s2498_s12  }
  0x11   : > { %2452 = sst [smem:[#allocation15_spill]] %s1695_s20  ;;  %s31_s27 = sadd.s32 1, %s1707_s23 }
  0x12   : > { %2453 = sst [smem:[#allocation16_spill]] %s1703_s22  ;;  %p32_p0 = scmp.ge.s32.totalorder %s31_s27, 2 }
  0x13   : > { %2454 = sst [smem:[#allocation17_spill]] %s1707_s23  ;;  %s34_s28 = sadd.s32 1, %s1711_s24 }
  0x14   : > { %2455 = sst [smem:[#allocation18_spill]] %s1711_s24  ;;  %p2444_p1 = scmp.eq.s32.totalorder %s1715_s25, 0 }
  0x15   : > { %p2436_p2 = scmp.eq.s32.totalorder %s1819_s26, 0  ;;  %s2507_s27 = smov (%p32_p0, %s31_s27), 0 }
  0x16   : > { %2456 = sst [smem:[#allocation19_spill]] %s2507_s27  ;;  %s2509_s28 = smov (!%p32_p0, %s34_s28), %s1711_s24 }
  0x17   : > { %s39_s29 = ssub.s32 %s1707_s23, %s2507_s27  ;;  %s69_s30 = sadd.s32 1, %s1683_s17 }
  0x18   : > { %p36_p3 = scmp.ge.s32.totalorder %s2509_s28, 2  ;;  %p67_p4 = scmp.eq.s32.totalorder %s39_s29, 0 }
  0x19   : > { %p76_p5 = scmp.ne.s32.totalorder %s1683_s17, %s1679_s16  ;;  %p82_p6 = scmp.ne.s32.totalorder %s1679_s16, %s1675_s15 }
  0x1a   : > { %s2511_s28 = smov (%p36_p3, %s2509_s28), 0  ;;  %p2435_p11 = scmp.lt.s32.totalorder %s1715_s25, 4 }
  0x1b   : > { %2457 = sst [smem:[#allocation20_spill]] %s2511_s28  ;;  %s1842_s5 = ssub.s32 %s1711_s24, %s2511_s28 }
  0x1c   : > { %s1838_s4 = scalar_select %p67_p4, %s1683_s17, %s69_s30  }
  0x1d   : > { %p1846_p7 = por %p76_p5, %p2444_p1  ;;  %s40_s7 = sor.u32 %s39_s29, %s1842_s5 }
  0x1e   : > { %2458 = sst [smem:[#allocation21_spill]] %s1838_s4  ;;  %p1853_p8 = por %p82_p6, %p2436_p2 }
  0x1f   : > { %p1857_p9 = scmp.eq.s32.totalorder %s40_s7, 0  ;;  %s182_s10 = sand.u32 1, %s1715_s25  }
  0x20   : > { %s184_s11 = sand.u32 1, %s1683_s17   ;;  %s1269_s30 = sshll.u32 %s1707_s23, 12 }
  0x21   : > { %s1250_s15 = sshll.u32 %s184_s11, 8  ;;  %s2462_s1 = sld [smem:[#allocation24_spill]] }
  0x22   : > { %s186_s29 = scalar_lea.vmem [#allocation6], %s1250_s15  ;;  %p1873_p12 = pnand %p2435_p11, %p1846_p7 }
  0x23   : > { %s193_s3 = sshll.u32 %s186_s29, 4  ;;  %p1256_p13 = scmp.ge.s32.totalorder %s1715_s25, 1  ;;  %s194_s3 = int_to_ptr.vmem [resolvable:$true] %s193_s3 }
  0x24   : > { %p222_p0 = scmp.lt.s32.totalorder %s1715_s25, 5  ;;  %s1879_s22 = scalar_lea.sflag [#allocation7], %s182_s10 }
  0x25   : > { %p1481_p3 = pneg %p1873_p12  ;;  %s1492_s11 = scalar_lea.vmem %s194_s3, 4096 }
  0x26   : > { %p1493_p4 = scmp.ne.s32.totalorder %s194_s3, %s1492_s11  ;;  %s1717_s27 = smov [#allocation6]  }
  0x27   : > { %s192_s4 = scalar_lea.hbm %s2462_s1, %s1269_s30  ;;  %s1497_s28 = sshll.u32 %s1717_s27, 4  ;;  %s1498_s28 = int_to_ptr.vmem [resolvable:$false] %s1497_s28 }
  0x28   : > { %p1495_p5 = pnand %p1493_p4, %p1481_p3  ;;  %s1499_s6 = scalar_lea.vmem %s1498_s28, 8192 }
  0x29   : > { %p1500_p10 = scmp.lt.s32.totalorder %s194_s3, %s1498_s28  ;;  %p1501_p7 = scmp.lt.s32.totalorder %s1499_s6, %s1492_s11 }
  0x2a   : > { %p1496_p6 = pneg %p1495_p5 }
  0x2b   : > { %p1502_p11 = por %p1501_p7, %p1500_p10 }
  0x2d   : > { %p1503_p2 = pnand %p1502_p11, %p1496_p6 }
  0x2f   : > { %1506 = shalt.err (!%p1503_p2)
}
  0x30   : > { %s2437_s15 = smov 128   ;;  %s2439_s10 = smov 8  }
  0x31   : > { %1350 = dma.hbm_to_vmem [thread:$0]  (!%p1873_p12), %s192_s4, 4096, %s194_s3, %s1879_s22, %s2437_s15, %s2437_s15, %s2439_s10  }
  0x32   : > { %p1893_p2 = pnand %p1256_p13, %p222_p0  ;;  %s43_s29 = sadd.s32 1, %s1695_s20 }
  0x33   : > { %p50_p10 = scmp.ne.s32.totalorder %s1695_s20, %s1691_s19  ;;  %p56_p3 = scmp.ne.s32.totalorder %s1691_s19, %s1687_s18 }
  0x34   : > { %s1903_s11 = scalar_select %p1857_p9, %s1695_s20, %s43_s29  }
  0x35   : > { %p1907_p11 = por %p2444_p1, %p50_p10  ;;  %s158_s3 = sand.u32 1, %s1695_s20  }
  0x36   : > { %2465 = sst [smem:[#allocation22_spill]] %s1903_s11  ;;  %s1247_s4 = sshll.u32 %s1707_s23, 1 }
  0x37   : > { %p2467_p12 = scmp.eq.s32.totalorder %s1819_s26, 0  ;;  %s1245_s28 = sshll.u32 %s158_s3, 8 }
  0x38   : > { %s1268_s6 = sshll.u32 %s1711_s24, 7  ;;  %s162_s29 = scalar_lea.vmem [#allocation3], %s1245_s28 }
  0x39   : > { %p1917_p13 = por %p2467_p12, %p56_p3  ;;  %s169_s15 = sadd.s32 %s1268_s6, %s1247_s4 }
  0x3a   : > { %s1249_s9 = sshll.u32 %s169_s15, 6  ;;  %s172_s10 = sshll.u32 %s162_s29, 4  ;;  %s173_s10 = int_to_ptr.vmem [resolvable:$true] %s172_s10 }
  0x3b   : > { %s2469_s0 = sld [smem:[#allocation23_spill]]  ;;  %p2470_p9 = scmp.lt.s32.totalorder %s1715_s25, 4 }
  0x3c   : > { %s159_s23 = scalar_lea.sflag [#allocation4], %s158_s3  ;;  %s1520_s20 = scalar_lea.vmem %s173_s10, 4096 }
  0x3d   : > { %p1929_p0 = pnand %p2470_p9, %p1907_p11  ;;  %p1521_p5 = scmp.ne.s32.totalorder %s173_s10, %s1520_s20 }
  0x3e   : > { %s1720_s15 = smov [#allocation3]  }
  0x3f   : > { %p1509_p4 = pneg %p1929_p0  ;;  %s1525_s4 = sshll.u32 %s1720_s15, 4  ;;  %s1526_s4 = int_to_ptr.vmem [resolvable:$false] %s1525_s4 }
  0x40   : > { %s1527_s1 = scalar_lea.vmem %s1526_s4, 8192  ;;  %p1528_p10 = scmp.lt.s32.totalorder %s173_s10, %s1526_s4 }
  0x41   : > { %s171_s17 = scalar_lea.hbm %s2469_s0, %s1249_s9  ;;  %p1523_p6 = pnand %p1521_p5, %p1509_p4 }
  0x42   : > { %p1529_p3 = scmp.lt.s32.totalorder %s1527_s1, %s1520_s20 }
  0x43   : > { %p1524_p7 = pneg %p1523_p6 }
  0x44   : > { %p1530_p12 = por %p1529_p3, %p1528_p10 }
  0x46   : > { %p1531_p1 = pnand %p1530_p12, %p1524_p7 }
  0x48   : > { %1534 = shalt.err (!%p1531_p1)
}
  0x49   : > { %s1721_s11 = smov 256   ;;  %s2472_s27 = smov 8  }
  0x4a   : > { %s2473_s3 = smov 128   ;;  %s1242_s20 = sadd.s32 4294967294, %s1715_s25  }
  0x4b   : > { %1347 = dma.hbm_to_vmem [thread:$0]  (!%p1929_p0), %s171_s17, 4096, %s173_s10, %s159_s23, %s1721_s11, %s2473_s3, %s2472_s27  }
  0x4c   : > { %s95_s28 = sadd.s32 1, %s1671_s14  ;;  %p102_p1 = scmp.ne.s32.totalorder %s1671_s14, %s1667_s13 }
  0x4d   : > { %p2474_p11 = scmp.eq.s32.totalorder %s1842_s5, 0  ;;  %p2475_p9 = scmp.eq.s32.totalorder %s1715_s25, 0 }
  0x4e   : > { %p108_p5 = scmp.ne.s32.totalorder %s1667_s13, %s1663_s12  ;;  %p132_p6 = scmp.eq.s32.totalorder %s1819_s26, 3 }
  0x4f   : > { %s1946_s6 = scalar_select %p2474_p11, %s1671_s14, %s95_s28  }
  0x50   : > { %p1950_p4 = por %p102_p1, %p2475_p9  ;;  %p138_p7 = scmp.eq.s32.totalorder %s1242_s20, 3 }
  0x51   : > { %p2477_p10 = scmp.eq.s32.totalorder %s1819_s26, 0  ;;  %s205_s17 = sand.u32 1, %s1671_s14  }
  0x52   : > { %p1964_p0 = por %p132_p6, %p102_p1  ;;  %p1968_p12 = por %p138_p7, %p108_p5 }
  0x53   : > { %p1959_p3 = por %p108_p5, %p2477_p10  ;;  %s1253_s10 = sshll.u32 %s205_s17, 8 }
  0x54   : > { %s2479_s23 = scalar_select %p1964_p0, 1, 0 }
  0x55   : > { %s2478_s29 = scalar_select %p1959_p3, 1, 0 }
  0x56   : > { %s2480_s5 = scalar_select %p1968_p12, 1, 0 }
  0x57   : > { %s1270_s18 = sshll.u32 %s1711_s24, 12  ;;  %s207_s11 = scalar_lea.vmem [#allocation8], %s1253_s10 }
  0x58   : > { %s213_s1 = scalar_lea.hbm %s2430_s2, %s1270_s18  ;;  %s214_s20 = sshll.u32 %s207_s11, 4  ;;  %s215_s20 = int_to_ptr.vmem [resolvable:$true] %s214_s20 }
  0x59   : > { %p2481_p11 = scmp.lt.s32.totalorder %s1715_s25, 4  ;;  %s1548_s0 = scalar_lea.vmem %s215_s20, 4096 }
  0x5a   : > { %p1549_p5 = scmp.ne.s32.totalorder %s215_s20, %s1548_s0  ;;  %s1722_s17 = smov [#allocation8]  }
  0x5b   : > { %p1980_p9 = pnand %p2481_p11, %p1950_p4  ;;  %s1553_s24 = sshll.u32 %s1722_s17, 4  ;;  %s1554_s24 = int_to_ptr.vmem [resolvable:$false] %s1553_s24 }
  0x5c   : > { %s1555_s18 = scalar_lea.vmem %s1554_s24, 8192  ;;  %p1556_p10 = scmp.lt.s32.totalorder %s215_s20, %s1554_s24 }
  0x5d   : > { %p1537_p1 = pneg %p1980_p9  ;;  %p1557_p12 = scmp.lt.s32.totalorder %s1555_s18, %s1548_s0 }
  0x5f   : > { %p1551_p6 = pnand %p1549_p5, %p1537_p1  ;;  %p1558_p0 = por %p1557_p12, %p1556_p10 }
  0x61   : > { %p1552_p7 = pneg %p1551_p6 }
  0x63   : > { %p1559_p3 = pnand %p1558_p0, %p1552_p7 }
  0x65   : > { %1562 = shalt.err (!%p1559_p3)
}
  0x66   : > { %1353 = dma.hbm_to_vmem [thread:$0]  (!%p1980_p9), %s213_s1, 4096, %s215_s20, %s1879_s22, %s2473_s3, %s2473_s3, %s2472_s27  }
  0x67   : > { %226 = sbr.rel (%p1893_p2) target bundleno = 697 (0x2b9), region = 32  ;;  %s228_s9 = sand.u32 (!%p1893_p2), 1, %s1691_s19  }
  0x68   : > { %s1257_s10 = sshll.u32 (!%p1893_p2), %s228_s9, 8  ;;  %s229_s15 = scalar_lea.sflag (!%p1893_p2), [#allocation4], %s228_s9 }
  0x69   : > { %s1995_s24 = scalar_lea.vmem (!%p1893_p2), [#allocation3], %s1257_s10 }
  0x6c   : > { %1646 = dma.done.wait (%p1917_p13), %s229_s15, 4096  }
  0x6d   : > { %1648 = vsyncadd (%p1917_p13), %s229_s15, 4294963200  ;;  %s237_s0 = sand.u32 1, %s1819_s26   ;;  %s239_s22 = sand.u32 1, %s1679_s16  }
  0x6e   : > { %s1258_s27 = sshll.u32 %s239_s22, 8  ;;  %s238_s30 = scalar_lea.sflag [#allocation7], %s237_s0 }
  0x6f   : > { %s2003_s3 = scalar_lea.vmem [#allocation6], %s1258_s27 }
  0x70   : > { %1650 = dma.done.wait (%p1853_p8), %s238_s30, 4096  }
  0x71   : > { %1652 = vsyncadd (%p1853_p8), %s238_s30, 4294963200  ;;  %s248_s4 = sand.u32 1, %s1667_s13   ;;  %p2483_p2 = scmp.ne.s32.totalorder %s2478_s29, 0 }
  0x72   : > { %s1259_s7 = sshll.u32 %s248_s4, 8 }
  0x73   : > { %s2012_s1 = scalar_lea.vmem [#allocation8], %s1259_s7 }
  0x74   : > { %1654 = dma.done.wait (%p2483_p2), %s238_s30, 4096  }
  0x75   : > { %1656 = vsyncadd (%p2483_p2), %s238_s30, 4294963200  ;;  %s2018_s26 = scalar_lea.vmem [#allocation9], %s1259_s7  ;;  %p1261_p13 = scmp.ne.s32.totalorder %s1699_s21, 0 }
  0x77   : > { %291 = sbr.rel (%p1261_p13) target bundleno = 141 (0x8d), region = 48 }
  0x7c   : > { %v1723_v0 = vmov 0.0  }
  0x7d   : > { %292 = vst [vmem:[#allocation2 + $0xb0] sm:$0xff] %v1723_v0  ;;  %293 = vst [vmem:[#allocation2] sm:$0xff] %v1723_v0 }
  0x7e   : > { %294 = vst [vmem:[#allocation2 + $0xd8] sm:$0xff] %v1723_v0  ;;  %295 = vst [vmem:[#allocation2 + $0x18] sm:$0xff] %v1723_v0 }
  0x7f   : > { %296 = vst [vmem:[#allocation2 + $0x50] sm:$0xff] %v1723_v0  ;;  %297 = vst [vmem:[#allocation2 + $0x68] sm:$0xff] %v1723_v0 }
  0x80   : > { %298 = vst [vmem:[#allocation2 + $0x30] sm:$0xff] %v1723_v0  ;;  %299 = vst [vmem:[#allocation2 + $0x48] sm:$0xff] %v1723_v0 }
  0x81   : > { %300 = vst [vmem:[#allocation2 + $0x80] sm:$0xff] %v1723_v0  ;;  %301 = vst [vmem:[#allocation2 + $0x88] sm:$0xff] %v1723_v0 }
  0x82   : > { %302 = vst [vmem:[#allocation2 + $0xe8] sm:$0xff] %v1723_v0  ;;  %303 = vst [vmem:[#allocation2 + $0xb8] sm:$0xff] %v1723_v0 }
  0x83   : > { %304 = vst [vmem:[#allocation2 + $0x60] sm:$0xff] %v1723_v0  ;;  %305 = vst [vmem:[#allocation2 + $0xf0] sm:$0xff] %v1723_v0 }
  0x84   : > { %306 = vst [vmem:[#allocation2 + $0x8] sm:$0xff] %v1723_v0  ;;  %307 = vst [vmem:[#allocation2 + $0x78] sm:$0xff] %v1723_v0 }
  0x85   : > { %308 = vst [vmem:[#allocation2 + $0x38] sm:$0xff] %v1723_v0  ;;  %309 = vst [vmem:[#allocation2 + $0x58] sm:$0xff] %v1723_v0 }
  0x86   : > { %310 = vst [vmem:[#allocation2 + $0x40] sm:$0xff] %v1723_v0  ;;  %311 = vst [vmem:[#allocation2 + $0xc8] sm:$0xff] %v1723_v0 }
  0x87   : > { %312 = vst [vmem:[#allocation2 + $0xe0] sm:$0xff] %v1723_v0  ;;  %313 = vst [vmem:[#allocation2 + $0x90] sm:$0xff] %v1723_v0 }
  0x88   : > { %314 = vst [vmem:[#allocation2 + $0x70] sm:$0xff] %v1723_v0  ;;  %315 = vst [vmem:[#allocation2 + $0xc0] sm:$0xff] %v1723_v0 }
  0x89   : > { %316 = vst [vmem:[#allocation2 + $0xa8] sm:$0xff] %v1723_v0  ;;  %317 = vst [vmem:[#allocation2 + $0xd0] sm:$0xff] %v1723_v0 }
  0x8a   : > { %318 = vst [vmem:[#allocation2 + $0x10] sm:$0xff] %v1723_v0  ;;  %319 = vst [vmem:[#allocation2 + $0x28] sm:$0xff] %v1723_v0 }
  0x8b   : > { %320 = vst [vmem:[#allocation2 + $0xa0] sm:$0xff] %v1723_v0  ;;  %321 = vst [vmem:[#allocation2 + $0xf8] sm:$0xff] %v1723_v0 }
  0x8c   : > { %322 = vst [vmem:[#allocation2 + $0x20] sm:$0xff] %v1723_v0  ;;  %323 = vst [vmem:[#allocation2 + $0x98] sm:$0xff] %v1723_v0 }
  0x8d PF: > { %v467_v1 = vld [vmem:[%s2003_s3 + $0x78] sm:$0xff]  ;;  %v1724_v2 = vmov 0.0   ;;  %v466_v3 = vld [vmem:[%s2003_s3 + $0x70] sm:$0xff]  ;;  %v465_v4 = vld [vmem:[%s2003_s3 + $0x68] sm:$0xff]  ;;  %p1262_p8 = scmp.ne.s32.totalorder %s1699_s21, 1 }
  0x8e   : > { %484 = vmatprep.subr.mxu0 %v1724_v2  ;;  %1272 = vmatprep.subr.mxu1 %v1724_v2  ;;  %v464_v5 = vld [vmem:[%s2003_s3 + $0x60] sm:$0xff]  ;;  %v463_v6 = vld [vmem:[%s2003_s3 + $0x58] sm:$0xff]  ;;  %v462_v7 = vld [vmem:[%s2003_s3 + $0x50] sm:$0xff] }
  0x8f   : > { %485 = vmatpush1.msra.mxu0 %v467_v1  ;;  %1304 = vmatpush1.msra.mxu1 %v467_v1  ;;  %v461_v8 = vld [vmem:[%s2003_s3 + $0x48] sm:$0xff]  ;;  %v460_v9 = vld [vmem:[%s2003_s3 + $0x40] sm:$0xff]  ;;  %v459_v10 = vld [vmem:[%s2003_s3 + $0x38] sm:$0xff] }
  0x90   : > { %486 = vmatprep.subr.mxu0 %v1724_v2  ;;  %1273 = vmatprep.subr.mxu1 %v1724_v2  ;;  %v458_v11 = vld [vmem:[%s2003_s3 + $0x30] sm:$0xff]  ;;  %v457_v12 = vld [vmem:[%s2003_s3 + $0x28] sm:$0xff]  ;;  %v456_v13 = vld [vmem:[%s2003_s3 + $0x20] sm:$0xff] }
  0x91   : > { %487 = vmatpush1.msra.mxu0 %v466_v3  ;;  %1305 = vmatpush1.msra.mxu1 %v466_v3  ;;  %v455_v14 = vld [vmem:[%s2003_s3 + $0x18] sm:$0xff]  ;;  %v454_v15 = vld [vmem:[%s2003_s3 + $0x10] sm:$0xff]  ;;  %v453_v16 = vld [vmem:[%s2003_s3 + $0x8] sm:$0xff] }
  0x92   : > { %488 = vmatprep.subr.mxu0 %v1724_v2  ;;  %1274 = vmatprep.subr.mxu1 %v1724_v2  ;;  %v452_v17 = vld [vmem:[%s2003_s3] sm:$0xff]  ;;  %v483_v18 = vld [vmem:[%s2003_s3 + $0xf8] sm:$0xff]  ;;  %v482_v19 = vld [vmem:[%s2003_s3 + $0xf0] sm:$0xff] }
  0x93   : > { %489 = vmatpush1.msra.mxu0 %v465_v4  ;;  %1306 = vmatpush1.msra.mxu1 %v465_v4  ;;  %v481_v20 = vld [vmem:[%s2003_s3 + $0xe8] sm:$0xff]  ;;  %v480_v21 = vld [vmem:[%s2003_s3 + $0xe0] sm:$0xff]  ;;  %v479_v22 = vld [vmem:[%s2003_s3 + $0xd8] sm:$0xff] }
  0x94   : > { %490 = vmatprep.subr.mxu0 %v1724_v2  ;;  %1275 = vmatprep.subr.mxu1 %v1724_v2  ;;  %v478_v23 = vld [vmem:[%s2003_s3 + $0xd0] sm:$0xff]  ;;  %v477_v24 = vld [vmem:[%s2003_s3 + $0xc8] sm:$0xff]  ;;  %v476_v25 = vld [vmem:[%s2003_s3 + $0xc0] sm:$0xff] }
  0x95   : > { %491 = vmatpush1.msra.mxu0 %v464_v5  ;;  %1307 = vmatpush1.msra.mxu1 %v464_v5  ;;  %v475_v26 = vld [vmem:[%s2003_s3 + $0xb8] sm:$0xff]  ;;  %v474_v27 = vld [vmem:[%s2003_s3 + $0xb0] sm:$0xff]  ;;  %v473_v28 = vld [vmem:[%s2003_s3 + $0xa8] sm:$0xff] }
  0x96   : > { %492 = vmatprep.subr.mxu0 %v1724_v2  ;;  %1276 = vmatprep.subr.mxu1 %v1724_v2  ;;  %v472_v29 = vld [vmem:[%s2003_s3 + $0xa0] sm:$0xff]  ;;  %v471_v30 = vld [vmem:[%s2003_s3 + $0x98] sm:$0xff]  ;;  %v470_v31 = vld [vmem:[%s2003_s3 + $0x90] sm:$0xff] }
  0x97   : > { %493 = vmatpush1.msra.mxu0 %v463_v6  ;;  %1308 = vmatpush1.msra.mxu1 %v463_v6  ;;  %v324_v32 = vld [vmem:[%s1995_s24] sm:$0xff]  ;;  %v469_v34 = vld [vmem:[%s2003_s3 + $0x88] sm:$0xff]  ;;  %v326_v44 = vld [vmem:[%s1995_s24 + $0x10] sm:$0xff] }
  0x98   : > { %494 = vmatprep.subr.mxu0 %v1724_v2  ;;  %1277 = vmatprep.subr.mxu1 %v1724_v2  ;;  %v340_v33 = vld [vmem:[%s1995_s24 + $0x80] sm:$0xff]  ;;  %v325_v35 = vld [vmem:[%s1995_s24 + $0x8] sm:$0xff]  ;;  %v357_v38 = vunpack.c.h.bf16 %v324_v32  ;;  %v356_v40 = vunpack.c.l.bf16 %v324_v32  ;;  %v342_v45 = vld [vmem:[%s1995_s24 + $0x90] sm:$0xff]  ;;  %v361_v48 = vunpack.c.h.bf16 %v326_v44  ;;  %v360_v52 = vunpack.c.l.bf16 %v326_v44 }
  0x99   : > { %495 = vmatpush1.msra.mxu0 %v462_v7  ;;  %1309 = vmatpush1.msra.mxu1 %v462_v7  ;;  %v341_v36 = vld [vmem:[%s1995_s24 + $0x88] sm:$0xff]  ;;  %v468_v37 = vld [vmem:[%s2003_s3 + $0x80] sm:$0xff]  ;;  %v389_v39 = vunpack.c.h.bf16 %v340_v33  ;;  %v388_v41 = vunpack.c.l.bf16 %v340_v33  ;;  %v359_v42 = vunpack.c.h.bf16 %v325_v35  ;;  %v358_v46 = vunpack.c.l.bf16 %v325_v35  ;;  %v327_v50 = vld [vmem:[%s1995_s24 + $0x18] sm:$0xff] }
  0x9a   : > { %496 = vmatprep.subr.mxu0 %v1724_v2  ;;  %1278 = vmatprep.subr.mxu1 %v1724_v2  ;;  %v391_v43 = vunpack.c.h.bf16 %v341_v36  ;;  %v390_v47 = vunpack.c.l.bf16 %v341_v36  ;;  %v393_v49 = vunpack.c.h.bf16 %v342_v45  ;;  %v343_v51 = vld [vmem:[%s1995_s24 + $0x98] sm:$0xff]  ;;  %v392_v53 = vunpack.c.l.bf16 %v342_v45  ;;  %v328_v56 = vld [vmem:[%s1995_s24 + $0x20] sm:$0xff]  ;;  %v329_v62 = vld [vmem:[%s1995_s24 + $0x28] sm:$0xff] }
  0x9b   : > { %497 = vmatpush1.msra.mxu0 %v461_v8  ;;  %1310 = vmatpush1.msra.mxu1 %v461_v8  ;;  %v363_v54 = vunpack.c.h.bf16 %v327_v50  ;;  %v395_v55 = vunpack.c.h.bf16 %v343_v51  ;;  %v344_v57 = vld [vmem:[%s1995_s24 + $0xa0] sm:$0xff]  ;;  %v362_v58 = vunpack.c.l.bf16 %v327_v50  ;;  %v394_v59 = vunpack.c.l.bf16 %v343_v51  ;;  %v345_v63 = vld [vmem:[%s1995_s24 + $0xa8] sm:$0xff]  ;;  %v330_v4 = vld [vmem:[%s1995_s24 + $0x30] sm:$0xff] }
  0x9c   : > { %498 = vmatprep.subr.mxu0 %v1724_v2  ;;  %1279 = vmatprep.subr.mxu1 %v1724_v2  ;;  %v365_v60 = vunpack.c.h.bf16 %v328_v56  ;;  %v397_v61 = vunpack.c.h.bf16 %v344_v57  ;;  %v364_v0 = vunpack.c.l.bf16 %v328_v56  ;;  %v396_v1 = vunpack.c.l.bf16 %v344_v57  ;;  %v346_v5 = vld [vmem:[%s1995_s24 + $0xb0] sm:$0xff]  ;;  %v351_v35 = vld [vmem:[%s1995_s24 + $0xd8] sm:$0xff] }
  0x9d   : > { %499 = vmatpush1.msra.mxu0 %v460_v9  ;;  %1311 = vmatpush1.msra.mxu1 %v460_v9  ;;  %v399_v3 = vunpack.c.h.bf16 %v345_v63  ;;  %v366_v6 = vunpack.c.l.bf16 %v329_v62  ;;  %v398_v7 = vunpack.c.l.bf16 %v345_v63  ;;  %v369_v8 = vunpack.c.h.bf16 %v330_v4 }
  0x9e   : > { %500 = vmatprep.subr.mxu0 %v1724_v2  ;;  %1280 = vmatprep.subr.mxu1 %v1724_v2  ;;  %v401_v9 = vunpack.c.h.bf16 %v346_v5 }
  0x9f   : > { %501 = vmatpush1.msra.mxu0 %v459_v10  ;;  %1312 = vmatpush1.msra.mxu1 %v459_v10  ;;  %v331_v10 = vld [vmem:[%s1995_s24 + $0x38] sm:$0xff] }
  0xa0   : > { %502 = vmatprep.subr.mxu0 %v1724_v2  ;;  %1281 = vmatprep.subr.mxu1 %v1724_v2 }
  0xa1   : > { %503 = vmatpush1.msra.mxu0 %v458_v11  ;;  %1313 = vmatpush1.msra.mxu1 %v458_v11  ;;  %v347_v11 = vld [vmem:[%s1995_s24 + $0xb8] sm:$0xff] }
  0xa2   : > { %504 = vmatprep.subr.mxu0 %v1724_v2  ;;  %1282 = vmatprep.subr.mxu1 %v1724_v2 }
  0xa3   : > { %505 = vmatpush1.msra.mxu0 %v457_v12  ;;  %1314 = vmatpush1.msra.mxu1 %v457_v12  ;;  %v368_v12 = vunpack.c.l.bf16 %v330_v4 }
  0xa4   : > { %506 = vmatprep.subr.mxu0 %v1724_v2  ;;  %1283 = vmatprep.subr.mxu1 %v1724_v2 }
  0xa5   : > { %507 = vmatpush1.msra.mxu0 %v456_v13  ;;  %1315 = vmatpush1.msra.mxu1 %v456_v13  ;;  %v400_v13 = vunpack.c.l.bf16 %v346_v5 }
  0xa6   : > { %508 = vmatprep.subr.mxu0 %v1724_v2  ;;  %1284 = vmatprep.subr.mxu1 %v1724_v2 }
  0xa7   : > { %509 = vmatpush1.msra.mxu0 %v455_v14  ;;  %1316 = vmatpush1.msra.mxu1 %v455_v14  ;;  %v371_v14 = vunpack.c.h.bf16 %v331_v10 }
  0xa8   : > { %510 = vmatprep.subr.mxu0 %v1724_v2  ;;  %1285 = vmatprep.subr.mxu1 %v1724_v2 }
  0xa9   : > { %511 = vmatpush1.msra.mxu0 %v454_v15  ;;  %1317 = vmatpush1.msra.mxu1 %v454_v15  ;;  %v403_v15 = vunpack.c.h.bf16 %v347_v11 }
  0xaa   : > { %512 = vmatprep.subr.mxu0 %v1724_v2  ;;  %1286 = vmatprep.subr.mxu1 %v1724_v2 }
  0xab   : > { %513 = vmatpush1.msra.mxu0 %v453_v16  ;;  %1318 = vmatpush1.msra.mxu1 %v453_v16  ;;  %v332_v16 = vld [vmem:[%s1995_s24 + $0x40] sm:$0xff] }
  0xac   : > { %514 = vmatprep.subr.mxu0 %v1724_v2  ;;  %1287 = vmatprep.subr.mxu1 %v1724_v2 }
  0xad   : > { %515 = vmatpush1.msra.mxu0 %v452_v17  ;;  %1319 = vmatpush1.msra.mxu1 %v452_v17  ;;  %v348_v17 = vld [vmem:[%s1995_s24 + $0xc0] sm:$0xff] }
  0xae   : > { %516 = vmatprep.subr.mxu0 %v1724_v2  ;;  %1288 = vmatprep.subr.mxu1 %v1724_v2 }
  0xaf   : > { %517 = vmatpush2.msra.mxu0 %v483_v18  ;;  %1320 = vmatpush2.msra.mxu1 %v483_v18  ;;  %v370_v18 = vunpack.c.l.bf16 %v331_v10  ;;  %v421_v10 = vld [vmem:[#allocation2] sm:$0xff] }
  0xb0   : > { %518 = vmatprep.subr.mxu0 %v1724_v2  ;;  %1289 = vmatprep.subr.mxu1 %v1724_v2 }
  0xb1   : > { %519 = vmatpush2.msra.mxu0 %v482_v19  ;;  %1321 = vmatpush2.msra.mxu1 %v482_v19  ;;  %v402_v19 = vunpack.c.l.bf16 %v347_v11  ;;  %v437_v11 = vld [vmem:[#allocation2 + $0x58] sm:$0xff] }
  0xb2   : > { %520 = vmatprep.subr.mxu0 %v1724_v2  ;;  %1290 = vmatprep.subr.mxu1 %v1724_v2 }
  0xb3   : > { %521 = vmatpush2.msra.mxu0 %v481_v20  ;;  %1322 = vmatpush2.msra.mxu1 %v481_v20  ;;  %v373_v20 = vunpack.c.h.bf16 %v332_v16 }
  0xb4   : > { %522 = vmatprep.subr.mxu0 %v1724_v2  ;;  %1291 = vmatprep.subr.mxu1 %v1724_v2 }
  0xb5   : > { %523 = vmatpush2.msra.mxu0 %v480_v21  ;;  %1323 = vmatpush2.msra.mxu1 %v480_v21  ;;  %v405_v21 = vunpack.c.h.bf16 %v348_v17 }
  0xb6   : > { %524 = vmatprep.subr.mxu0 %v1724_v2  ;;  %1292 = vmatprep.subr.mxu1 %v1724_v2 }
  0xb7   : > { %525 = vmatpush2.msra.mxu0 %v479_v22  ;;  %1324 = vmatpush2.msra.mxu1 %v479_v22  ;;  %v333_v22 = vld [vmem:[%s1995_s24 + $0x48] sm:$0xff] }
  0xb8   : > { %526 = vmatprep.subr.mxu0 %v1724_v2  ;;  %1293 = vmatprep.subr.mxu1 %v1724_v2 }
  0xb9   : > { %527 = vmatpush2.msra.mxu0 %v478_v23  ;;  %1325 = vmatpush2.msra.mxu1 %v478_v23  ;;  %v349_v23 = vld [vmem:[%s1995_s24 + $0xc8] sm:$0xff] }
  0xba   : > { %528 = vmatprep.subr.mxu0 %v1724_v2  ;;  %1294 = vmatprep.subr.mxu1 %v1724_v2 }
  0xbb   : > { %529 = vmatpush2.msra.mxu0 %v477_v24  ;;  %1326 = vmatpush2.msra.mxu1 %v477_v24  ;;  %v372_v24 = vunpack.c.l.bf16 %v332_v16 }
  0xbc   : > { %530 = vmatprep.subr.mxu0 %v1724_v2  ;;  %1295 = vmatprep.subr.mxu1 %v1724_v2 }
  0xbd   : > { %531 = vmatpush2.msra.mxu0 %v476_v25  ;;  %1327 = vmatpush2.msra.mxu1 %v476_v25  ;;  %v404_v25 = vunpack.c.l.bf16 %v348_v17 }
  0xbe   : > { %532 = vmatprep.subr.mxu0 %v1724_v2  ;;  %1296 = vmatprep.subr.mxu1 %v1724_v2 }
  0xbf   : > { %533 = vmatpush2.msra.mxu0 %v475_v26  ;;  %1328 = vmatpush2.msra.mxu1 %v475_v26  ;;  %v375_v26 = vunpack.c.h.bf16 %v333_v22 }
  0xc0   : > { %534 = vmatprep.subr.mxu0 %v1724_v2  ;;  %1297 = vmatprep.subr.mxu1 %v1724_v2 }
  0xc1   : > { %535 = vmatpush2.msra.mxu0 %v474_v27  ;;  %1329 = vmatpush2.msra.mxu1 %v474_v27  ;;  %v407_v27 = vunpack.c.h.bf16 %v349_v23 }
  0xc2   : > { %536 = vmatprep.subr.mxu0 %v1724_v2  ;;  %1298 = vmatprep.subr.mxu1 %v1724_v2 }
  0xc3   : > { %537 = vmatpush2.msra.mxu0 %v473_v28  ;;  %1330 = vmatpush2.msra.mxu1 %v473_v28  ;;  %v334_v28 = vld [vmem:[%s1995_s24 + $0x50] sm:$0xff] }
  0xc4   : > { %538 = vmatprep.subr.mxu0 %v1724_v2  ;;  %1299 = vmatprep.subr.mxu1 %v1724_v2  ;;  %v377_v32 = vunpack.c.h.bf16 %v334_v28  ;;  %v376_v36 = vunpack.c.l.bf16 %v334_v28 }
  0xc5   : > { %539 = vmatpush2.msra.mxu0 %v472_v29  ;;  %1331 = vmatpush2.msra.mxu1 %v472_v29  ;;  %v350_v29 = vld [vmem:[%s1995_s24 + $0xd0] sm:$0xff] }
  0xc6   : > { %540 = vmatprep.subr.mxu0 %v1724_v2  ;;  %1300 = vmatprep.subr.mxu1 %v1724_v2  ;;  %v409_v33 = vunpack.c.h.bf16 %v350_v29 }
  0xc7   : > { %541 = vmatpush2.msra.mxu0 %v471_v30  ;;  %1332 = vmatpush2.msra.mxu1 %v471_v30  ;;  %v374_v30 = vunpack.c.l.bf16 %v333_v22 }
  0xc8   : > { %542 = vmatprep.subr.mxu0 %v1724_v2  ;;  %1301 = vmatprep.subr.mxu1 %v1724_v2 }
  0xc9   : > { %543 = vmatpush2.msra.mxu0 %v470_v31  ;;  %1333 = vmatpush2.msra.mxu1 %v470_v31  ;;  %v406_v31 = vunpack.c.l.bf16 %v349_v23 }
  0xca   : > { %544 = vmatprep.subr.mxu0 %v1724_v2  ;;  %1302 = vmatprep.subr.mxu1 %v1724_v2 }
  0xcb   : > { %545 = vmatpush2.msra.mxu0 %v469_v34  ;;  %1334 = vmatpush2.msra.mxu1 %v469_v34  ;;  %v335_v34 = vld [vmem:[%s1995_s24 + $0x58] sm:$0xff] }
  0xcc   : > { %546 = vmatprep.subr.mxu0 %v1724_v2  ;;  %1303 = vmatprep.subr.mxu1 %v1724_v2  ;;  %v367_v2 = vunpack.c.h.bf16 %v329_v62 }
  0xcd   : > { %547 = vmatpush2.msra.mxu0 %v468_v37  ;;  %1335 = vmatpush2.msra.mxu1 %v468_v37  ;;  %v408_v37 = vunpack.c.l.bf16 %v350_v29 }
  0xce   : > { %548 = vmatprep.mubr.f32.mxu0 %v357_v38  ;;  %628 = vmatprep.mubr.f32.mxu1 %v389_v39  ;;  %v379_v38 = vunpack.c.h.bf16 %v335_v34  ;;  %v411_v39 = vunpack.c.h.bf16 %v351_v35 }
  0xcf   : > { %549 = vmatmul.mubr.f32.vlgmr.msra.gmra.mxu0 %v356_v40  ;;  %629 = vmatmul.mubr.f32.vlgmr.msra.gmra.mxu1 %v388_v41  ;;  %v336_v40 = vld [vmem:[%s1995_s24 + $0x60] sm:$0xff] }
  0xd0   : > { %553 = vmatprep.mubr.f32.mxu0 %v359_v42  ;;  %633 = vmatprep.mubr.f32.mxu1 %v391_v43  ;;  %v352_v41 = vld [vmem:[%s1995_s24 + $0xe0] sm:$0xff]  ;;  %v378_v42 = vunpack.c.l.bf16 %v335_v34  ;;  %v410_v43 = vunpack.c.l.bf16 %v351_v35  ;;  %v381_v44 = vunpack.c.h.bf16 %v336_v40  ;;  %v424_v34 = vld [vmem:[#allocation2 + $0x50] sm:$0xff] }
  0xd1   : > { %v413_v45 = vunpack.c.h.bf16 %v352_v41  ;;  %v440_v35 = vld [vmem:[#allocation2 + $0xe0] sm:$0xff] }
  0xd3   : > { %554 = vmatmul.mubr.f32.gmra.mxu0 %v358_v46  ;;  %634 = vmatmul.mubr.f32.gmra.mxu1 %v390_v47  ;;  %v337_v46 = vld [vmem:[%s1995_s24 + $0x68] sm:$0xff] }
  0xd4   : > { %558 = vmatprep.mubr.f32.mxu0 %v361_v48  ;;  %638 = vmatprep.mubr.f32.mxu1 %v393_v49  ;;  %v353_v47 = vld [vmem:[%s1995_s24 + $0xe8] sm:$0xff]  ;;  %v380_v48 = vunpack.c.l.bf16 %v336_v40  ;;  %v412_v49 = vunpack.c.l.bf16 %v352_v41  ;;  %v383_v50 = vunpack.c.h.bf16 %v337_v46 }
  0xd5   : > { %v415_v51 = vunpack.c.h.bf16 %v353_v47 }
  0xd7   : > { %559 = vmatmul.mubr.f32.gmra.mxu0 %v360_v52  ;;  %639 = vmatmul.mubr.f32.gmra.mxu1 %v392_v53  ;;  %v338_v52 = vld [vmem:[%s1995_s24 + $0x70] sm:$0xff] }
  0xd8   : > { %563 = vmatprep.mubr.f32.mxu0 %v363_v54  ;;  %643 = vmatprep.mubr.f32.mxu1 %v395_v55  ;;  %v354_v53 = vld [vmem:[%s1995_s24 + $0xf0] sm:$0xff]  ;;  %v382_v54 = vunpack.c.l.bf16 %v337_v46  ;;  %v414_v55 = vunpack.c.l.bf16 %v353_v47  ;;  %v385_v56 = vunpack.c.h.bf16 %v338_v52 }
  0xd9   : > { %v417_v57 = vunpack.c.h.bf16 %v354_v53 }
  0xdb   : > { %564 = vmatmul.mubr.f32.gmra.mxu0 %v362_v58  ;;  %644 = vmatmul.mubr.f32.gmra.mxu1 %v394_v59  ;;  %v339_v58 = vld [vmem:[%s1995_s24 + $0x78] sm:$0xff] }
  0xdc   : > { %568 = vmatprep.mubr.f32.mxu0 %v365_v60  ;;  %648 = vmatprep.mubr.f32.mxu1 %v397_v61  ;;  %v355_v59 = vld [vmem:[%s1995_s24 + $0xf8] sm:$0xff]  ;;  %v384_v60 = vunpack.c.l.bf16 %v338_v52  ;;  %v416_v61 = vunpack.c.l.bf16 %v354_v53  ;;  %v387_v62 = vunpack.c.h.bf16 %v339_v58 }
  0xdd   : > { %v419_v63 = vunpack.c.h.bf16 %v355_v59 }
  0xdf   : > { %569 = vmatmul.mubr.f32.gmra.mxu0 %v364_v0  ;;  %649 = vmatmul.mubr.f32.gmra.mxu1 %v396_v1  ;;  %v386_v0 = vunpack.c.l.bf16 %v339_v58  ;;  %v418_v1 = vunpack.c.l.bf16 %v355_v59  ;;  %v427_v58 = vld [vmem:[#allocation2 + $0x48] sm:$0xff]  ;;  %v443_v59 = vld [vmem:[#allocation2 + $0xc0] sm:$0xff] }
  0xe0   : > { %573 = vmatprep.mubr.f32.mxu0 %v367_v2  ;;  %653 = vmatprep.mubr.f32.mxu1 %v399_v3  ;;  %v420_v2 = vld [vmem:[#allocation2 + $0xb0] sm:$0xff]  ;;  %v436_v3 = vld [vmem:[#allocation2 + $0x38] sm:$0xff] }
  0xe3   : > { %574 = vmatmul.mubr.f32.gmra.mxu0 %v366_v6  ;;  %654 = vmatmul.mubr.f32.gmra.mxu1 %v398_v7 }
  0xe4   : > { %578 = vmatprep.mubr.f32.mxu0 %v369_v8  ;;  %658 = vmatprep.mubr.f32.mxu1 %v401_v9 }
  0xe7   : > { %579 = vmatmul.mubr.f32.gmra.mxu0 %v368_v12  ;;  %659 = vmatmul.mubr.f32.gmra.mxu1 %v400_v13 }
  0xe8   : > { %583 = vmatprep.mubr.f32.mxu0 %v371_v14  ;;  %663 = vmatprep.mubr.f32.mxu1 %v403_v15 }
  0xeb   : > { %584 = vmatmul.mubr.f32.gmra.mxu0 %v370_v18  ;;  %664 = vmatmul.mubr.f32.gmra.mxu1 %v402_v19  ;;  %v422_v18 = vld [vmem:[#allocation2 + $0xd8] sm:$0xff]  ;;  %v438_v19 = vld [vmem:[#allocation2 + $0x40] sm:$0xff] }
  0xec   : > { %588 = vmatprep.mubr.f32.mxu0 %v373_v20  ;;  %668 = vmatprep.mubr.f32.mxu1 %v405_v21 }
  0xef   : > { %589 = vmatmul.mubr.f32.gmra.mxu0 %v372_v24  ;;  %669 = vmatmul.mubr.f32.gmra.mxu1 %v404_v25 }
  0xf0   : > { %593 = vmatprep.mubr.f32.mxu0 %v375_v26  ;;  %673 = vmatprep.mubr.f32.mxu1 %v407_v27  ;;  %v423_v26 = vld [vmem:[#allocation2 + $0x18] sm:$0xff]  ;;  %v439_v27 = vld [vmem:[#allocation2 + $0xc8] sm:$0xff] }
  0xf3   : > { %594 = vmatmul.mubr.f32.gmra.mxu0 %v374_v30  ;;  %674 = vmatmul.mubr.f32.gmra.mxu1 %v406_v31 }
  0xf4   : > { %598 = vmatprep.mubr.f32.mxu0 %v377_v32  ;;  %678 = vmatprep.mubr.f32.mxu1 %v409_v33 }
  0xf7   : > { %599 = vmatmul.mubr.f32.gmra.mxu0 %v376_v36  ;;  %679 = vmatmul.mubr.f32.gmra.mxu1 %v408_v37 }
  0xf8   : > { %603 = vmatprep.mubr.f32.mxu0 %v379_v38  ;;  %683 = vmatprep.mubr.f32.mxu1 %v411_v39 }
  0xfb   : > { %604 = vmatmul.mubr.f32.gmra.mxu0 %v378_v42  ;;  %684 = vmatmul.mubr.f32.gmra.mxu1 %v410_v43  ;;  %v425_v42 = vld [vmem:[#allocation2 + $0x68] sm:$0xff]  ;;  %v441_v43 = vld [vmem:[#allocation2 + $0x90] sm:$0xff] }
  0xfc   : > { %608 = vmatprep.mubr.f32.mxu0 %v381_v44  ;;  %688 = vmatprep.mubr.f32.mxu1 %v413_v45 }
  0xff   : > { %609 = vmatmul.mubr.f32.gmra.mxu0 %v380_v48  ;;  %689 = vmatmul.mubr.f32.gmra.mxu1 %v412_v49 }
 0x100   : > { %613 = vmatprep.mubr.f32.mxu0 %v383_v50  ;;  %693 = vmatprep.mubr.f32.mxu1 %v415_v51  ;;  %v426_v50 = vld [vmem:[#allocation2 + $0x30] sm:$0xff] }
 0x101   : > { %v442_v51 = vld [vmem:[#allocation2 + $0x70] sm:$0xff] }
 0x103   : > { %614 = vmatmul.mubr.f32.gmra.mxu0 %v382_v54  ;;  %694 = vmatmul.mubr.f32.gmra.mxu1 %v414_v55 }
 0x104   : > { %618 = vmatprep.mubr.f32.mxu0 %v385_v56  ;;  %698 = vmatprep.mubr.f32.mxu1 %v417_v57 }
 0x107   : > { %619 = vmatmul.mubr.f32.gmra.mxu0 %v384_v60  ;;  %699 = vmatmul.mubr.f32.gmra.mxu1 %v416_v61 }
 0x108   : > { %623 = vmatprep.mubr.f32.mxu0 %v387_v62  ;;  %703 = vmatprep.mubr.f32.mxu1 %v419_v63 }
 0x10b   : > { %624 = vmatmul.mubr.f32.gmra.mxu0 %v386_v0  ;;  %704 = vmatmul.mubr.f32.gmra.mxu1 %v418_v1 }
 0x18f   : > { %v550_v4 = vpop.f32.mrf.mxu0  ;;  %v630_v5 = vpop.f32.mrf.mxu1 }
 0x190   : > { %v709_v6 = vadd.f32 %v550_v4, %v420_v2  ;;  %v725_v7 = vadd.f32 %v630_v5, %v436_v3  ;;  %v428_v2 = vld [vmem:[#allocation2 + $0x80] sm:$0xff]  ;;  %v444_v3 = vld [vmem:[#allocation2 + $0xa8] sm:$0xff] }
 0x191   : > { %v552_v8 = vpop.f32.mrf.mxu0  ;;  %v632_v9 = vpop.f32.mrf.mxu1 }
 0x192   : > { %741 = vst [vmem:[#allocation2 + $0xb0] sm:$0xff] %v709_v6  ;;  %757 = vst [vmem:[#allocation2 + $0x38] sm:$0xff] %v725_v7 }
 0x193   : > { %v555_v12 = vpop.f32.mrf.mxu0  ;;  %v635_v13 = vpop.f32.mrf.mxu1 }
 0x194   : > { %v710_v14 = vadd.f32 %v555_v12, %v421_v10  ;;  %v726_v15 = vadd.f32 %v635_v13, %v437_v11  ;;  %v429_v10 = vld [vmem:[#allocation2 + $0x88] sm:$0xff]  ;;  %v445_v11 = vld [vmem:[#allocation2 + $0xd0] sm:$0xff] }
 0x195   : > { %v557_v16 = vpop.f32.mrf.mxu0  ;;  %v637_v17 = vpop.f32.mrf.mxu1 }
 0x196   : > { %742 = vst [vmem:[#allocation2] sm:$0xff] %v710_v14  ;;  %758 = vst [vmem:[#allocation2 + $0x58] sm:$0xff] %v726_v15 }
 0x197   : > { %v560_v20 = vpop.f32.mrf.mxu0  ;;  %v640_v21 = vpop.f32.mrf.mxu1 }
 0x198   : > { %v711_v22 = vadd.f32 %v560_v20, %v422_v18  ;;  %v727_v23 = vadd.f32 %v640_v21, %v438_v19  ;;  %v430_v18 = vld [vmem:[#allocation2 + $0xe8] sm:$0xff]  ;;  %v446_v19 = vld [vmem:[#allocation2 + $0x10] sm:$0xff] }
 0x199   : > { %v562_v24 = vpop.f32.mrf.mxu0  ;;  %v642_v25 = vpop.f32.mrf.mxu1 }
 0x19a   : > { %743 = vst [vmem:[#allocation2 + $0xd8] sm:$0xff] %v711_v22  ;;  %759 = vst [vmem:[#allocation2 + $0x40] sm:$0xff] %v727_v23 }
 0x19b   : > { %v565_v28 = vpop.f32.mrf.mxu0  ;;  %v645_v29 = vpop.f32.mrf.mxu1 }
 0x19c   : > { %v712_v30 = vadd.f32 %v565_v28, %v423_v26  ;;  %v728_v31 = vadd.f32 %v645_v29, %v439_v27  ;;  %v431_v26 = vld [vmem:[#allocation2 + $0xb8] sm:$0xff]  ;;  %v447_v27 = vld [vmem:[#allocation2 + $0x28] sm:$0xff] }
 0x19d   : > { %v567_v32 = vpop.f32.mrf.mxu0  ;;  %v647_v33 = vpop.f32.mrf.mxu1 }
 0x19e   : > { %744 = vst [vmem:[#allocation2 + $0x18] sm:$0xff] %v712_v30  ;;  %760 = vst [vmem:[#allocation2 + $0xc8] sm:$0xff] %v728_v31 }
 0x19f   : > { %v570_v36 = vpop.f32.mrf.mxu0  ;;  %v650_v37 = vpop.f32.mrf.mxu1 }
 0x1a0   : > { %v713_v38 = vadd.f32 %v570_v36, %v424_v34  ;;  %v729_v39 = vadd.f32 %v650_v37, %v440_v35  ;;  %v432_v34 = vld [vmem:[#allocation2 + $0x60] sm:$0xff] }
 0x1a1   : > { %v572_v40 = vpop.f32.mrf.mxu0  ;;  %v652_v41 = vpop.f32.mrf.mxu1  ;;  %v448_v35 = vld [vmem:[#allocation2 + $0xa0] sm:$0xff] }
 0x1a2   : > { %745 = vst [vmem:[#allocation2 + $0x50] sm:$0xff] %v713_v38  ;;  %761 = vst [vmem:[#allocation2 + $0xe0] sm:$0xff] %v729_v39 }
 0x1a3   : > { %v575_v44 = vpop.f32.mrf.mxu0  ;;  %v655_v45 = vpop.f32.mrf.mxu1 }
 0x1a4   : > { %v714_v46 = vadd.f32 %v575_v44, %v425_v42  ;;  %v730_v47 = vadd.f32 %v655_v45, %v441_v43  ;;  %v433_v42 = vld [vmem:[#allocation2 + $0xf0] sm:$0xff]  ;;  %v449_v43 = vld [vmem:[#allocation2 + $0xf8] sm:$0xff] }
 0x1a5   : > { %v577_v48 = vpop.f32.mrf.mxu0  ;;  %v657_v49 = vpop.f32.mrf.mxu1 }
 0x1a6   : > { %746 = vst [vmem:[#allocation2 + $0x68] sm:$0xff] %v714_v46  ;;  %762 = vst [vmem:[#allocation2 + $0x90] sm:$0xff] %v730_v47 }
 0x1a7   : > { %v580_v52 = vpop.f32.mrf.mxu0  ;;  %v660_v53 = vpop.f32.mrf.mxu1 }
 0x1a8   : > { %v715_v54 = vadd.f32 %v580_v52, %v426_v50  ;;  %v731_v55 = vadd.f32 %v660_v53, %v442_v51  ;;  %v434_v50 = vld [vmem:[#allocation2 + $0x8] sm:$0xff]  ;;  %v450_v51 = vld [vmem:[#allocation2 + $0x20] sm:$0xff] }
 0x1a9   : > { %v582_v56 = vpop.f32.mrf.mxu0  ;;  %v662_v57 = vpop.f32.mrf.mxu1 }
 0x1aa   : > { %747 = vst [vmem:[#allocation2 + $0x30] sm:$0xff] %v715_v54  ;;  %763 = vst [vmem:[#allocation2 + $0x70] sm:$0xff] %v731_v55 }
 0x1ab   : > { %v585_v60 = vpop.f32.mrf.mxu0  ;;  %v665_v61 = vpop.f32.mrf.mxu1 }
 0x1ac   : > { %v716_v62 = vadd.f32 %v585_v60, %v427_v58  ;;  %v732_v63 = vadd.f32 %v665_v61, %v443_v59  ;;  %v435_v58 = vld [vmem:[#allocation2 + $0x78] sm:$0xff] }
 0x1ad   : > { %v587_v0 = vpop.f32.mrf.mxu0  ;;  %v667_v1 = vpop.f32.mrf.mxu1  ;;  %v451_v59 = vld [vmem:[#allocation2 + $0x98] sm:$0xff] }
 0x1ae   : > { %748 = vst [vmem:[#allocation2 + $0x48] sm:$0xff] %v716_v62  ;;  %764 = vst [vmem:[#allocation2 + $0xc0] sm:$0xff] %v732_v63 }
 0x1af   : > { %v590_v4 = vpop.f32.mrf.mxu0  ;;  %v670_v5 = vpop.f32.mrf.mxu1 }
 0x1b0   : > { %v717_v6 = vadd.f32 %v590_v4, %v428_v2  ;;  %v733_v7 = vadd.f32 %v670_v5, %v444_v3 }
 0x1b1   : > { %v592_v8 = vpop.f32.mrf.mxu0  ;;  %v672_v9 = vpop.f32.mrf.mxu1 }
 0x1b2   : > { %749 = vst [vmem:[#allocation2 + $0x80] sm:$0xff] %v717_v6  ;;  %765 = vst [vmem:[#allocation2 + $0xa8] sm:$0xff] %v733_v7 }
 0x1b3   : > { %v595_v12 = vpop.f32.mrf.mxu0  ;;  %v675_v13 = vpop.f32.mrf.mxu1 }
 0x1b4   : > { %v718_v14 = vadd.f32 %v595_v12, %v429_v10  ;;  %v734_v15 = vadd.f32 %v675_v13, %v445_v11 }
 0x1b5   : > { %v597_v16 = vpop.f32.mrf.mxu0  ;;  %v677_v17 = vpop.f32.mrf.mxu1 }
 0x1b6   : > { %750 = vst [vmem:[#allocation2 + $0x88] sm:$0xff] %v718_v14  ;;  %766 = vst [vmem:[#allocation2 + $0xd0] sm:$0xff] %v734_v15 }
 0x1b7   : > { %v600_v20 = vpop.f32.mrf.mxu0  ;;  %v680_v21 = vpop.f32.mrf.mxu1 }
 0x1b8   : > { %v719_v22 = vadd.f32 %v600_v20, %v430_v18  ;;  %v735_v23 = vadd.f32 %v680_v21, %v446_v19 }
 0x1b9   : > { %v602_v24 = vpop.f32.mrf.mxu0  ;;  %v682_v25 = vpop.f32.mrf.mxu1 }
 0x1ba   : > { %751 = vst [vmem:[#allocation2 + $0xe8] sm:$0xff] %v719_v22  ;;  %767 = vst [vmem:[#allocation2 + $0x10] sm:$0xff] %v735_v23 }
 0x1bb   : > { %v605_v28 = vpop.f32.mrf.mxu0  ;;  %v685_v29 = vpop.f32.mrf.mxu1 }
 0x1bc   : > { %v720_v30 = vadd.f32 %v605_v28, %v431_v26  ;;  %v736_v31 = vadd.f32 %v685_v29, %v447_v27 }
 0x1bd   : > { %v607_v32 = vpop.f32.mrf.mxu0  ;;  %v687_v33 = vpop.f32.mrf.mxu1 }
 0x1be   : > { %752 = vst [vmem:[#allocation2 + $0xb8] sm:$0xff] %v720_v30  ;;  %768 = vst [vmem:[#allocation2 + $0x28] sm:$0xff] %v736_v31 }
 0x1bf   : > { %v610_v36 = vpop.f32.mrf.mxu0  ;;  %v690_v37 = vpop.f32.mrf.mxu1 }
 0x1c0   : > { %v721_v38 = vadd.f32 %v610_v36, %v432_v34  ;;  %v737_v39 = vadd.f32 %v690_v37, %v448_v35 }
 0x1c1   : > { %v612_v40 = vpop.f32.mrf.mxu0  ;;  %v692_v41 = vpop.f32.mrf.mxu1 }
 0x1c2   : > { %753 = vst [vmem:[#allocation2 + $0x60] sm:$0xff] %v721_v38  ;;  %769 = vst [vmem:[#allocation2 + $0xa0] sm:$0xff] %v737_v39 }
 0x1c3   : > { %v615_v44 = vpop.f32.mrf.mxu0  ;;  %v695_v45 = vpop.f32.mrf.mxu1 }
 0x1c4   : > { %v722_v46 = vadd.f32 %v615_v44, %v433_v42  ;;  %v738_v47 = vadd.f32 %v695_v45, %v449_v43 }
 0x1c5   : > { %v617_v48 = vpop.f32.mrf.mxu0  ;;  %v697_v49 = vpop.f32.mrf.mxu1 }
 0x1c6   : > { %754 = vst [vmem:[#allocation2 + $0xf0] sm:$0xff] %v722_v46  ;;  %770 = vst [vmem:[#allocation2 + $0xf8] sm:$0xff] %v738_v47 }
 0x1c7   : > { %v620_v52 = vpop.f32.mrf.mxu0  ;;  %v700_v53 = vpop.f32.mrf.mxu1 }
 0x1c8   : > { %v723_v54 = vadd.f32 %v620_v52, %v434_v50  ;;  %v739_v55 = vadd.f32 %v700_v53, %v450_v51 }
 0x1c9   : > { %v622_v56 = vpop.f32.mrf.mxu0  ;;  %v702_v57 = vpop.f32.mrf.mxu1 }
 0x1ca   : > { %755 = vst [vmem:[#allocation2 + $0x8] sm:$0xff] %v723_v54  ;;  %771 = vst [vmem:[#allocation2 + $0x20] sm:$0xff] %v739_v55  ;;  %776 = sbr.rel (%p1262_p8) target bundleno = 670 (0x29e), region = 52 }
 0x1cb   : > { %v625_v60 = vpop.f32.mrf.mxu0  ;;  %v705_v61 = vpop.f32.mrf.mxu1 }
 0x1cc   : > { %v724_v62 = vadd.f32 %v625_v60, %v435_v58  ;;  %v740_v63 = vadd.f32 %v705_v61, %v451_v59 }
 0x1cd   : > { %v627_v0 = vpop.f32.mrf.mxu0  ;;  %v707_v1 = vpop.f32.mrf.mxu1 }
 0x1ce   : > { %756 = vst [vmem:[#allocation2 + $0x78] sm:$0xff] %v724_v62  ;;  %772 = vst [vmem:[#allocation2 + $0x98] sm:$0xff] %v740_v63 }
 0x1cf   : > { %v2151_v2 = vld [vmem:[%s2012_s1 + $0x10] sm:$0xff]  ;;  %v811_v3 = vld [vmem:[#allocation2 + $0xd8] sm:$0xff]  ;;  %v2154_v4 = vld [vmem:[%s2012_s1] sm:$0xff] }
 0x1d0   : > { %v843_v5 = vmul.f32 %v811_v3, %v2151_v2  ;;  %v809_v6 = vld [vmem:[#allocation2 + $0xb0] sm:$0xff]  ;;  %v2158_v7 = vld [vmem:[%s2012_s1 + $0x18] sm:$0xff]  ;;  %v2162_v10 = vld [vmem:[%s2012_s1 + $0x8] sm:$0xff] }
 0x1d1   : > { %v841_v8 = vmul.f32 %v809_v6, %v2154_v4  ;;  %v812_v9 = vld [vmem:[#allocation2 + $0x18] sm:$0xff]  ;;  %v810_v11 = vld [vmem:[#allocation2] sm:$0xff]  ;;  %v2167_v14 = vld [vmem:[%s2012_s1 + $0x28] sm:$0xff] }
 0x1d2   : > { %877 = vadd.xlane.f32.xlu1 %v843_v5  ;;  %v844_v12 = vmul.f32 %v812_v9, %v2158_v7  ;;  %v842_v13 = vmul.f32 %v810_v11, %v2162_v10  ;;  %v814_v15 = vld [vmem:[#allocation2 + $0x68] sm:$0xff]  ;;  %v2170_v16 = vld [vmem:[%s2012_s1 + $0x20] sm:$0xff]  ;;  %v813_v17 = vld [vmem:[#allocation2 + $0x50] sm:$0xff] }
 0x1d3   : > { %873 = vadd.xlane.f32.xlu0 %v841_v8  ;;  %v846_v18 = vmul.f32 %v814_v15, %v2167_v14  ;;  %v845_v19 = vmul.f32 %v813_v17, %v2170_v16  ;;  %v2175_v20 = vld [vmem:[%s2012_s1 + $0x38] sm:$0xff]  ;;  %v816_v21 = vld [vmem:[#allocation2 + $0x48] sm:$0xff]  ;;  %v2178_v22 = vld [vmem:[%s2012_s1 + $0x30] sm:$0xff] }
 0x1d4   : > { %v815_v23 = vld [vmem:[#allocation2 + $0x30] sm:$0xff]  ;;  %v848_v24 = vmul.f32 %v816_v21, %v2175_v20  ;;  %v2183_v26 = vld [vmem:[%s2012_s1 + $0x48] sm:$0xff]  ;;  %v2186_v28 = vld [vmem:[%s2012_s1 + $0x40] sm:$0xff] }
 0x1d5   : > { %v847_v25 = vmul.f32 %v815_v23, %v2178_v22  ;;  %v818_v27 = vld [vmem:[#allocation2 + $0x88] sm:$0xff]  ;;  %v817_v29 = vld [vmem:[#allocation2 + $0x80] sm:$0xff]  ;;  %v2191_v32 = vld [vmem:[%s2012_s1 + $0x58] sm:$0xff] }
 0x1d6   : > { %879 = vadd.xlane.f32.xlu1 %v844_v12  ;;  %v850_v30 = vmul.f32 %v818_v27, %v2183_v26  ;;  %v849_v31 = vmul.f32 %v817_v29, %v2186_v28  ;;  %v820_v33 = vld [vmem:[#allocation2 + $0xb8] sm:$0xff]  ;;  %v2194_v34 = vld [vmem:[%s2012_s1 + $0x50] sm:$0xff]  ;;  %v819_v35 = vld [vmem:[#allocation2 + $0xe8] sm:$0xff] }
 0x1d7   : > { %875 = vadd.xlane.f32.xlu0 %v842_v13  ;;  %v852_v36 = vmul.f32 %v820_v33, %v2191_v32  ;;  %v851_v37 = vmul.f32 %v819_v35, %v2194_v34  ;;  %v2199_v38 = vld [vmem:[%s2012_s1 + $0x68] sm:$0xff]  ;;  %v822_v39 = vld [vmem:[#allocation2 + $0xf0] sm:$0xff]  ;;  %v2202_v40 = vld [vmem:[%s2012_s1 + $0x60] sm:$0xff] }
 0x1d8   : > { %v821_v41 = vld [vmem:[#allocation2 + $0x60] sm:$0xff]  ;;  %v854_v42 = vmul.f32 %v822_v39, %v2199_v38  ;;  %v2207_v44 = vld [vmem:[%s2012_s1 + $0x78] sm:$0xff]  ;;  %v2210_v46 = vld [vmem:[%s2012_s1 + $0x70] sm:$0xff] }
 0x1d9   : > { %v853_v43 = vmul.f32 %v821_v41, %v2202_v40  ;;  %v824_v45 = vld [vmem:[#allocation2 + $0x78] sm:$0xff]  ;;  %v823_v47 = vld [vmem:[#allocation2 + $0x8] sm:$0xff]  ;;  %v2218_v52 = vld [vmem:[%s2012_s1 + $0x80] sm:$0xff] }
 0x1da   : > { %883 = vadd.xlane.f32.xlu1 %v846_v18  ;;  %v856_v48 = vmul.f32 %v824_v45, %v2207_v44  ;;  %v855_v49 = vmul.f32 %v823_v47, %v2210_v46  ;;  %v2215_v50 = vld [vmem:[%s2012_s1 + $0x88] sm:$0xff]  ;;  %v826_v51 = vld [vmem:[#allocation2 + $0x58] sm:$0xff]  ;;  %v2226_v58 = vld [vmem:[%s2012_s1 + $0x90] sm:$0xff] }
 0x1db   : > { %881 = vadd.xlane.f32.xlu0 %v845_v19  ;;  %v825_v53 = vld [vmem:[#allocation2 + $0x38] sm:$0xff]  ;;  %v858_v54 = vmul.f32 %v826_v51, %v2215_v50  ;;  %v828_v57 = vld [vmem:[#allocation2 + $0xc8] sm:$0xff]  ;;  %v827_v59 = vld [vmem:[#allocation2 + $0x40] sm:$0xff]  ;;  %v971_v51 = vmul.f32 0.1, %v2151_v2 }
 0x1dc   : > { %v857_v55 = vmul.f32 %v825_v53, %v2218_v52  ;;  %v2223_v56 = vld [vmem:[%s2012_s1 + $0x98] sm:$0xff]  ;;  %v859_v61 = vmul.f32 %v827_v59, %v2226_v58  ;;  %v2231_v62 = vld [vmem:[%s2012_s1 + $0xa8] sm:$0xff]  ;;  %v830_v63 = vld [vmem:[#allocation2 + $0x90] sm:$0xff]  ;;  %v969_v53 = vmul.f32 0.1, %v2154_v4 }
 0x1dd   : > { %v860_v60 = vmul.f32 %v828_v57, %v2223_v56  ;;  %v2234_v0 = vld [vmem:[%s2012_s1 + $0xa0] sm:$0xff]  ;;  %v862_v3 = vmul.f32 %v830_v63, %v2231_v62  ;;  %v2239_v6 = vld [vmem:[%s2012_s1 + $0xb8] sm:$0xff]  ;;  %v2242_v9 = vld [vmem:[%s2012_s1 + $0xb0] sm:$0xff]  ;;  %v970_v59 = vmul.f32 0.1, %v2162_v10 }
 0x1de   : > { %887 = vadd.xlane.f32.xlu1 %v848_v24  ;;  %v829_v1 = vld [vmem:[#allocation2 + $0xe0] sm:$0xff]  ;;  %v831_v11 = vld [vmem:[#allocation2 + $0x70] sm:$0xff]  ;;  %v2247_v15 = vld [vmem:[%s2012_s1 + $0xc8] sm:$0xff]  ;;  %v1001_v57 = vsub.f32 1.0, %v969_v53  ;;  %v973_v2 = vmul.f32 0.1, %v2170_v16 }
 0x1df   : > { %885 = vadd.xlane.f32.xlu0 %v847_v25  ;;  %v861_v5 = vmul.f32 %v829_v1, %v2234_v0  ;;  %v832_v8 = vld [vmem:[#allocation2 + $0xc0] sm:$0xff]  ;;  %v863_v13 = vmul.f32 %v831_v11, %v2242_v9  ;;  %v834_v17 = vld [vmem:[#allocation2 + $0xd0] sm:$0xff]  ;;  %v833_v19 = vld [vmem:[#allocation2 + $0xa8] sm:$0xff]  ;;  %v1002_v11 = vsub.f32 1.0, %v970_v59  ;;  %v980_v53 = vmul.f32 0.1, %v2191_v32 }
 0x1e0   : > { %v864_v12 = vmul.f32 %v832_v8, %v2239_v6  ;;  %v2250_v18 = vld [vmem:[%s2012_s1 + $0xc0] sm:$0xff]  ;;  %v866_v21 = vmul.f32 %v834_v17, %v2247_v15  ;;  %v2255_v24 = vld [vmem:[%s2012_s1 + $0xd8] sm:$0xff]  ;;  %v836_v25 = vld [vmem:[#allocation2 + $0x28] sm:$0xff]  ;;  %v981_v32 = vmul.f32 0.1, %v2202_v40 }
 0x1e1   : > { %v865_v23 = vmul.f32 %v833_v19, %v2250_v18  ;;  %v2258_v27 = vld [vmem:[%s2012_s1 + $0xd0] sm:$0xff]  ;;  %v2263_v33 = vld [vmem:[%s2012_s1 + $0xe8] sm:$0xff]  ;;  %v838_v35 = vld [vmem:[#allocation2 + $0xf8] sm:$0xff]  ;;  %v976_v19 = vmul.f32 0.1, %v2175_v20 }
 0x1e2   : > { %891 = vadd.xlane.f32.xlu1 %v850_v30  ;;  %v835_v29 = vld [vmem:[#allocation2 + $0x10] sm:$0xff]  ;;  %v868_v30 = vmul.f32 %v836_v25, %v2255_v24  ;;  %v870_v39 = vmul.f32 %v838_v35, %v2263_v33  ;;  %v839_v47 = vld [vmem:[#allocation2 + $0x20] sm:$0xff]  ;;  %v977_v20 = vmul.f32 0.1, %v2186_v28 }
 0x1e3   : > { %889 = vadd.xlane.f32.xlu0 %v849_v31  ;;  %v867_v31 = vmul.f32 %v835_v29, %v2258_v27  ;;  %v2274_v45 = vld [vmem:[%s2012_s1 + $0xf0] sm:$0xff]  ;;  %v1008_v35 = vsub.f32 1.0, %v976_v19 }
 0x1e6   : > { %895 = vadd.xlane.f32.xlu1 %v852_v36  ;;  %v2266_v36 = vld [vmem:[%s2012_s1 + $0xe0] sm:$0xff] }
 0x1e7   : > { %893 = vadd.xlane.f32.xlu0 %v851_v37  ;;  %v837_v37 = vld [vmem:[#allocation2 + $0xa0] sm:$0xff] }
 0x1e8   : > { %v869_v41 = vmul.f32 %v837_v37, %v2266_v36  ;;  %v978_v37 = vmul.f32 0.1, %v2183_v26  ;;  %v979_v26 = vmul.f32 0.1, %v2194_v34 }
 0x1ea   : > { %899 = vadd.xlane.f32.xlu1 %v854_v42  ;;  %v2271_v42 = vld [vmem:[%s2012_s1 + $0xf8] sm:$0xff] }
 0x1eb   : > { %897 = vadd.xlane.f32.xlu0 %v853_v43  ;;  %v840_v43 = vld [vmem:[#allocation2 + $0x98] sm:$0xff] }
 0x1ee   : > { %903 = vadd.xlane.f32.xlu1 %v856_v48  ;;  %v872_v48 = vmul.f32 %v840_v43, %v2271_v42 }
 0x1ef   : > { %901 = vadd.xlane.f32.xlu0 %v855_v49  ;;  %v871_v49 = vmul.f32 %v839_v47, %v2274_v45 }
 0x1f2   : > { %907 = vadd.xlane.f32.xlu1 %v858_v54  ;;  %v1003_v54 = vsub.f32 1.0, %v971_v51  ;;  %v1010_v51 = vsub.f32 1.0, %v978_v37 }
 0x1f3   : > { %905 = vadd.xlane.f32.xlu0 %v857_v55  ;;  %v972_v55 = vmul.f32 0.1, %v2158_v7 }
 0x1f6   : > { %911 = vadd.xlane.f32.xlu1 %v860_v60 }
 0x1f7   : > { %909 = vadd.xlane.f32.xlu0 %v859_v61 }
 0x1fa   : > { %915 = vadd.xlane.f32.xlu1 %v862_v3  ;;  %v1004_v3 = vsub.f32 1.0, %v972_v55  ;;  %v1009_v55 = vsub.f32 1.0, %v977_v20 }
 0x1fb   : > { %913 = vadd.xlane.f32.xlu0 %v861_v5  ;;  %v974_v5 = vmul.f32 0.1, %v2167_v14  ;;  %v975_v14 = vmul.f32 0.1, %v2178_v22 }
 0x1fd   : > { %v1006_v17 = vsub.f32 1.0, %v974_v5  ;;  %v1011_v5 = vsub.f32 1.0, %v979_v26 }
 0x1fe   : > { %919 = vadd.xlane.f32.xlu1 %v864_v12 }
 0x1ff   : > { %917 = vadd.xlane.f32.xlu0 %v863_v13 }
 0x202   : > { %923 = vadd.xlane.f32.xlu1 %v866_v21 }
 0x203   : > { %921 = vadd.xlane.f32.xlu0 %v865_v23  ;;  %v1005_v23 = vsub.f32 1.0, %v973_v2 }
 0x206   : > { %927 = vadd.xlane.f32.xlu1 %v868_v30 }
 0x207   : > { %925 = vadd.xlane.f32.xlu0 %v867_v31 }
 0x20a   : > { %931 = vadd.xlane.f32.xlu1 %v870_v39 }
 0x20b   : > { %929 = vadd.xlane.f32.xlu0 %v869_v41  ;;  %v1007_v41 = vsub.f32 1.0, %v975_v14 }
 0x20e   : > { %935 = vadd.xlane.f32.xlu1 %v872_v48 }
 0x20f   : > { %933 = vadd.xlane.f32.xlu0 %v871_v49 }
 0x25b   : > { %v878_v60 = vpop.xlane.xlu1 %877 }
 0x25c   : > { %v939_v61 = vmul.f32 0.01, %v878_v60  ;;  %v874_v63 = vpop.xlane.xlu0 %873 }
 0x25d   : > { %v937_v1 = vmul.f32 0.01, %v874_v63  ;;  %v1012_v63 = vsub.f32 1.0, %v980_v53  ;;  %v990_v53 = vmul.f32 0.1, %v2231_v62 }
 0x25e   : > { %v1035_v8 = vsub.f32 %v1003_v54, %v939_v61  ;;  %v991_v62 = vmul.f32 0.1, %v2242_v9 }
 0x25f   : > { %v1033_v4 = vsub.f32 %v1001_v57, %v937_v1  ;;  %v880_v12 = vpop.xlane.xlu1 %879  ;;  %v982_v1 = vmul.f32 0.1, %v2199_v38  ;;  %v983_v38 = vmul.f32 0.1, %v2210_v46 }
 0x260   : > { %1067 = vst [vmem:[%s2018_s26 + $0x10] sm:$0xff] %v1035_v8  ;;  %v940_v7 = vmul.f32 0.01, %v880_v12  ;;  %v876_v13 = vpop.xlane.xlu0 %875 }
 0x261   : > { %1065 = vst [vmem:[%s2018_s26] sm:$0xff] %v1033_v4  ;;  %v938_v10 = vmul.f32 0.01, %v876_v13  ;;  %v1014_v12 = vsub.f32 1.0, %v982_v1 }
 0x262   : > { %v1036_v21 = vsub.f32 %v1004_v3, %v940_v7  ;;  %v984_v7 = vmul.f32 0.1, %v2207_v44  ;;  %v985_v44 = vmul.f32 0.1, %v2218_v52 }
 0x263   : > { %v1034_v25 = vsub.f32 %v1002_v11, %v938_v10  ;;  %v884_v29 = vpop.xlane.xlu1 %883  ;;  %v1013_v10 = vsub.f32 1.0, %v981_v32 }
 0x264   : > { %1068 = vst [vmem:[%s2018_s26 + $0x18] sm:$0xff] %v1036_v21  ;;  %v942_v16 = vmul.f32 0.01, %v884_v29  ;;  %v882_v30 = vpop.xlane.xlu0 %881  ;;  %v1016_v14 = vsub.f32 1.0, %v984_v7 }
 0x265   : > { %1066 = vst [vmem:[%s2018_s26 + $0x8] sm:$0xff] %v1034_v25  ;;  %v941_v31 = vmul.f32 0.01, %v882_v30  ;;  %v986_v25 = vmul.f32 0.1, %v2215_v50 }
 0x266   : > { %v1038_v39 = vsub.f32 %v1006_v17, %v942_v16  ;;  %v1015_v16 = vsub.f32 1.0, %v983_v38  ;;  %v987_v50 = vmul.f32 0.1, %v2226_v58 }
 0x267   : > { %v1037_v43 = vsub.f32 %v1005_v23, %v941_v31  ;;  %v888_v47 = vpop.xlane.xlu1 %887 }
 0x268   : > { %1070 = vst [vmem:[%s2018_s26 + $0x28] sm:$0xff] %v1038_v39  ;;  %v944_v22 = vmul.f32 0.01, %v888_v47  ;;  %v886_v48 = vpop.xlane.xlu0 %885  ;;  %v1018_v39 = vsub.f32 1.0, %v986_v25 }
 0x269   : > { %1069 = vst [vmem:[%s2018_s26 + $0x20] sm:$0xff] %v1037_v43  ;;  %v943_v49 = vmul.f32 0.01, %v886_v48  ;;  %v1017_v43 = vsub.f32 1.0, %v985_v44 }
 0x26a   : > { %v1040_v54 = vsub.f32 %v1008_v35, %v944_v22 }
 0x26b   : > { %v1039_v57 = vsub.f32 %v1007_v41, %v943_v49  ;;  %v892_v59 = vpop.xlane.xlu1 %891  ;;  %v988_v41 = vmul.f32 0.1, %v2223_v56  ;;  %v989_v56 = vmul.f32 0.1, %v2234_v0 }
 0x26c   : > { %1072 = vst [vmem:[%s2018_s26 + $0x38] sm:$0xff] %v1040_v54  ;;  %v946_v28 = vmul.f32 0.01, %v892_v59  ;;  %v890_v60 = vpop.xlane.xlu0 %889 }
 0x26d   : > { %1071 = vst [vmem:[%s2018_s26 + $0x30] sm:$0xff] %v1039_v57  ;;  %v945_v61 = vmul.f32 0.01, %v890_v60  ;;  %v1022_v60 = vsub.f32 1.0, %v990_v53  ;;  %v1021_v1 = vsub.f32 1.0, %v989_v56 }
 0x26e   : > { %v1042_v3 = vsub.f32 %v1010_v51, %v946_v28  ;;  %v1020_v51 = vsub.f32 1.0, %v988_v41  ;;  %v1000_v41 = vmul.f32 0.1, %v2271_v42 }
 0x26f   : > { %v1041_v8 = vsub.f32 %v1009_v55, %v945_v61  ;;  %v896_v11 = vpop.xlane.xlu1 %895  ;;  %v1019_v55 = vsub.f32 1.0, %v987_v50  ;;  %v992_v61 = vmul.f32 0.1, %v2239_v6  ;;  %v993_v6 = vmul.f32 0.1, %v2250_v18 }
 0x270   : > { %1074 = vst [vmem:[%s2018_s26 + $0x48] sm:$0xff] %v1042_v3  ;;  %v948_v34 = vmul.f32 0.01, %v896_v11  ;;  %v894_v2 = vpop.xlane.xlu0 %893 }
 0x271   : > { %1073 = vst [vmem:[%s2018_s26 + $0x40] sm:$0xff] %v1041_v8  ;;  %v947_v4 = vmul.f32 0.01, %v894_v2  ;;  %v1024_v11 = vsub.f32 1.0, %v992_v61 }
 0x272   : > { %v1044_v13 = vsub.f32 %v1012_v63, %v948_v34  ;;  %v994_v34 = vmul.f32 0.1, %v2247_v15  ;;  %v995_v15 = vmul.f32 0.1, %v2258_v27 }
 0x273   : > { %v1043_v17 = vsub.f32 %v1011_v5, %v947_v4  ;;  %v900_v19 = vpop.xlane.xlu1 %899  ;;  %v1023_v4 = vsub.f32 1.0, %v991_v62 }
 0x274   : > { %1076 = vst [vmem:[%s2018_s26 + $0x58] sm:$0xff] %v1044_v13  ;;  %v950_v40 = vmul.f32 0.01, %v900_v19  ;;  %v898_v21 = vpop.xlane.xlu0 %897  ;;  %v1026_v38 = vsub.f32 1.0, %v994_v34 }
 0x275   : > { %1075 = vst [vmem:[%s2018_s26 + $0x50] sm:$0xff] %v1043_v17  ;;  %v949_v23 = vmul.f32 0.01, %v898_v21  ;;  %v996_v17 = vmul.f32 0.1, %v2255_v24 }
 0x276   : > { %v1046_v29 = vsub.f32 %v1014_v12, %v950_v40  ;;  %v1025_v40 = vsub.f32 1.0, %v993_v6  ;;  %v997_v24 = vmul.f32 0.1, %v2266_v36 }
 0x277   : > { %v1045_v30 = vsub.f32 %v1013_v10, %v949_v23  ;;  %v904_v31 = vpop.xlane.xlu1 %903 }
 0x278   : > { %1078 = vst [vmem:[%s2018_s26 + $0x68] sm:$0xff] %v1046_v29  ;;  %v952_v46 = vmul.f32 0.01, %v904_v31  ;;  %v902_v35 = vpop.xlane.xlu0 %901  ;;  %v1028_v29 = vsub.f32 1.0, %v996_v17 }
 0x279   : > { %1077 = vst [vmem:[%s2018_s26 + $0x60] sm:$0xff] %v1045_v30  ;;  %v951_v37 = vmul.f32 0.01, %v902_v35  ;;  %v1027_v30 = vsub.f32 1.0, %v995_v15 }
 0x27a   : > { %v1048_v20 = vsub.f32 %v1016_v14, %v952_v46 }
 0x27b   : > { %v1047_v47 = vsub.f32 %v1015_v16, %v951_v37  ;;  %v908_v22 = vpop.xlane.xlu1 %907  ;;  %v998_v16 = vmul.f32 0.1, %v2263_v33  ;;  %v999_v33 = vmul.f32 0.1, %v2274_v45 }
 0x27c   : > { %1080 = vst [vmem:[%s2018_s26 + $0x78] sm:$0xff] %v1048_v20  ;;  %v954_v52 = vmul.f32 0.01, %v908_v22  ;;  %v906_v48 = vpop.xlane.xlu0 %905 }
 0x27d   : > { %1079 = vst [vmem:[%s2018_s26 + $0x70] sm:$0xff] %v1047_v47  ;;  %v953_v49 = vmul.f32 0.01, %v906_v48  ;;  %v1031_v42 = vsub.f32 1.0, %v999_v33 }
 0x27e   : > { %v1050_v54 = vsub.f32 %v1018_v39, %v954_v52  ;;  %v1030_v39 = vsub.f32 1.0, %v998_v16 }
 0x27f   : > { %v1049_v26 = vsub.f32 %v1017_v43, %v953_v49  ;;  %v912_v57 = vpop.xlane.xlu1 %911  ;;  %v1029_v43 = vsub.f32 1.0, %v997_v24  ;;  %v1032_v49 = vsub.f32 1.0, %v1000_v41 }
 0x280   : > { %1082 = vst [vmem:[%s2018_s26 + $0x88] sm:$0xff] %v1050_v54  ;;  %v956_v58 = vmul.f32 0.01, %v912_v57  ;;  %v910_v59 = vpop.xlane.xlu0 %909 }
 0x281   : > { %1081 = vst [vmem:[%s2018_s26 + $0x80] sm:$0xff] %v1049_v26  ;;  %v955_v28 = vmul.f32 0.01, %v910_v59 }
 0x282   : > { %v1052_v63 = vsub.f32 %v1020_v51, %v956_v58 }
 0x283   : > { %v1051_v3 = vsub.f32 %v1019_v55, %v955_v28  ;;  %v916_v5 = vpop.xlane.xlu1 %915 }
 0x284   : > { %1084 = vst [vmem:[%s2018_s26 + $0x98] sm:$0xff] %v1052_v63  ;;  %v958_v0 = vmul.f32 0.01, %v916_v5  ;;  %v914_v32 = vpop.xlane.xlu0 %913 }
 0x285   : > { %1083 = vst [vmem:[%s2018_s26 + $0x90] sm:$0xff] %v1051_v3  ;;  %v957_v8 = vmul.f32 0.01, %v914_v32 }
 0x286   : > { %v1054_v2 = vsub.f32 %v1022_v60, %v958_v0 }
 0x287   : > { %v1053_v12 = vsub.f32 %v1021_v1, %v957_v8  ;;  %v920_v7 = vpop.xlane.xlu1 %919 }
 0x288   : > { %1086 = vst [vmem:[%s2018_s26 + $0xa8] sm:$0xff] %v1054_v2  ;;  %v960_v9 = vmul.f32 0.01, %v920_v7  ;;  %v918_v13 = vpop.xlane.xlu0 %917 }
 0x289   : > { %1085 = vst [vmem:[%s2018_s26 + $0xa0] sm:$0xff] %v1053_v12  ;;  %v959_v10 = vmul.f32 0.01, %v918_v13 }
 0x28a   : > { %v1056_v19 = vsub.f32 %v1024_v11, %v960_v9 }
 0x28b   : > { %v1055_v21 = vsub.f32 %v1023_v4, %v959_v10  ;;  %v924_v23 = vpop.xlane.xlu1 %923 }
 0x28c   : > { %1088 = vst [vmem:[%s2018_s26 + $0xb8] sm:$0xff] %v1056_v19  ;;  %v962_v18 = vmul.f32 0.01, %v924_v23  ;;  %v922_v14 = vpop.xlane.xlu0 %921 }
 0x28d   : > { %1087 = vst [vmem:[%s2018_s26 + $0xb0] sm:$0xff] %v1055_v21  ;;  %v961_v25 = vmul.f32 0.01, %v922_v14 }
 0x28e   : > { %v1058_v44 = vsub.f32 %v1026_v38, %v962_v18 }
 0x28f   : > { %v1057_v31 = vsub.f32 %v1025_v40, %v961_v25  ;;  %v928_v46 = vpop.xlane.xlu1 %927 }
 0x290   : > { %1090 = vst [vmem:[%s2018_s26 + $0xc8] sm:$0xff] %v1058_v44  ;;  %v964_v27 = vmul.f32 0.01, %v928_v46  ;;  %v926_v35 = vpop.xlane.xlu0 %925 }
 0x291   : > { %1089 = vst [vmem:[%s2018_s26 + $0xc0] sm:$0xff] %v1057_v31  ;;  %v963_v37 = vmul.f32 0.01, %v926_v35 }
 0x292   : > { %v1060_v20 = vsub.f32 %v1028_v29, %v964_v27 }
 0x293   : > { %v1059_v50 = vsub.f32 %v1027_v30, %v963_v37  ;;  %v932_v47 = vpop.xlane.xlu1 %931 }
 0x294   : > { %1092 = vst [vmem:[%s2018_s26 + $0xd8] sm:$0xff] %v1060_v20  ;;  %v966_v36 = vmul.f32 0.01, %v932_v47  ;;  %v930_v22 = vpop.xlane.xlu0 %929 }
 0x295   : > { %1091 = vst [vmem:[%s2018_s26 + $0xd0] sm:$0xff] %v1059_v50  ;;  %v965_v52 = vmul.f32 0.01, %v930_v22 }
 0x296   : > { %v1062_v48 = vsub.f32 %v1030_v39, %v966_v36 }
 0x297   : > { %v1061_v51 = vsub.f32 %v1029_v43, %v965_v52  ;;  %v936_v53 = vpop.xlane.xlu1 %935 }
 0x298   : > { %1094 = vst [vmem:[%s2018_s26 + $0xe8] sm:$0xff] %v1062_v48  ;;  %v968_v54 = vmul.f32 0.01, %v936_v53  ;;  %v934_v55 = vpop.xlane.xlu0 %933 }
 0x299   : > { %1093 = vst [vmem:[%s2018_s26 + $0xe0] sm:$0xff] %v1061_v51  ;;  %v967_v45 = vmul.f32 0.01, %v934_v55 }
 0x29a   : > { %v1064_v56 = vsub.f32 %v1032_v49, %v968_v54 }
 0x29b   : > { %v1063_v26 = vsub.f32 %v1031_v42, %v967_v45 }
 0x29c   : > { %1096 = vst [vmem:[%s2018_s26 + $0xf8] sm:$0xff] %v1064_v56 }
 0x29d   : > { %1095 = vst [vmem:[%s2018_s26 + $0xf0] sm:$0xff] %v1063_v26 }
 0x29e PF: > { %s2484_s21 = sld [smem:[#allocation16_spill]]  ;;  %s1111_s18 = sshll.u32 %s2018_s26, 4  ;;  %s2349_s18 = int_to_ptr.vmem [resolvable:$true] %s1111_s18 }
 0x29f   : > { %s2485_s20 = sld [smem:[#allocation25_spill]]  ;;  %s2353_s9 = scalar_lea.sflag [#allocation5], %s248_s4 }
 0x2a0   : > { %s1563_s10 = scalar_lea.vmem %s2349_s18, 4096  ;;  %p2487_p3 = scmp.ne.s32.totalorder %s2479_s23, 0 }
 0x2a1   : > { %p1564_p4 = scmp.ne.s32.totalorder %s2349_s18, %s1563_s10  ;;  %s1725_s15 = smov [#allocation9]  }
 0x2a2   : > { %s1567_s24 = sshll.u32 %s1725_s15, 4  ;;  %s1568_s24 = int_to_ptr.vmem [resolvable:$false] %s1567_s24 }
 0x2a3   : > { %p1565_p0 = pnand %p1564_p4, %p2487_p3  ;;  %s1569_s0 = scalar_lea.vmem %s1568_s24, 8192 }
 0x2a4   : > { %s1271_s8 = sshll.u32 %s2484_s21, 12  ;;  %p1570_p11 = scmp.lt.s32.totalorder %s2349_s18, %s1568_s24 }
 0x2a5   : > { %s2486_s28 = smov %s2485_s20  ;;  %s2346_s17 = scalar_lea.hbm %s2485_s20, %s1271_s8 }
 0x2a6   : > { %p1566_p12 = pneg %p1565_p0  ;;  %p1571_p9 = scmp.lt.s32.totalorder %s1569_s0, %s1563_s10 }
 0x2a8   : > { %p1572_p1 = por %p1571_p9, %p1570_p11 }
 0x2aa   : > { %p1573_p5 = pnand %p1572_p1, %p1566_p12 }
 0x2ac   : > { %1576 = shalt.err (!%p1573_p5)
}
 0x2ad   : > { %s1577_s22 = scalar_lea.hbm %s2346_s17, 4096  ;;  %s1581_s3 = scalar_lea.hbm %s2486_s28, 8192 }
 0x2ae   : > { %p1578_p6 = scmp.ne.s32.totalorder %s2346_s17, %s1577_s22  ;;  %p1582_p2 = scmp.lt.s32.totalorder %s2346_s17, %s2486_s28 }
 0x2af   : > { %p1583_p13 = scmp.lt.s32.totalorder %s1581_s3, %s1577_s22 }
 0x2b0   : > { %p1579_p7 = pnand %p1578_p6, %p2487_p3 }
 0x2b1   : > { %p1584_p8 = por %p1583_p13, %p1582_p2 }
 0x2b2   : > { %p1580_p10 = pneg %p1579_p7 }
 0x2b4   : > { %p1585_p4 = pnand %p1584_p8, %p1580_p10 }
 0x2b6   : > { %1588 = shalt.err (!%p1585_p4)
}
 0x2b7   : > { %s1726_s1 = smov 128   ;;  %s1727_s26 = smov 8  }
 0x2b8   : > { %1342 = dma.vmem_to_hbm [thread:$0]  (%p2487_p3), %s2349_s18, 4096, %s2346_s17, %s2353_s9, %s1726_s1, %s1726_s1, %s1727_s26  }
 0x2b9 PF: > { %p1359_p0 = scmp.ge.s32.totalorder %s1715_s25, 2  ;;  %s1126_s21 = sand.u32 1, %s1663_s12  }
 0x2ba   : > { %p2488_p12 = scmp.ne.s32.totalorder %s2480_s5, 0  ;;  %s1127_s8 = scalar_lea.sflag [#allocation5], %s1126_s21 }
 0x2bc   : > { %p1355_p11 = pnand %p1359_p0, %p2488_p12 }
 0x2be   : > { %p1356_p9 = pneg %p1355_p11 }
 0x2c0   : > { %1658 = dma.done.wait (%p1356_p9), %s1127_s8, 4096  }
 0x2c1   : > { %1660 = vsyncadd (%p1356_p9), %s1127_s8, 4294963200  ;;  %s22_s25 = sadd.s32 1, %s1715_s25   ;;  %s2490_s23 = sld [smem:[#allocation14_spill]] }
 0x2c2   : > { %p2381_p1 = scmp.ge.s32.totalorder %s22_s25, 6   ;;  %s2491_s17 = sld [smem:[#allocation21_spill]] }
 0x2c3   : > { %s2492_s11 = sld [smem:[#allocation15_spill]]  ;;  %s2498_s12 = smov %s1667_s13 }
 0x2c4   : > { %s2493_s20 = sld [smem:[#allocation22_spill]]  ;;  %s2499_s13 = smov %s1671_s14 }
 0x2c5   : > { %s2494_s21 = sld [smem:[#allocation17_spill]]  ;;  %s2500_s14 = smov %s1946_s6 }
 0x2c6   : > { %s2495_s22 = sld [smem:[#allocation18_spill]]  ;;  %s2501_s15 = smov %s1679_s16 }
 0x2c7   : > { %s2496_s5 = sld [smem:[#allocation19_spill]]  ;;  %s2502_s16 = smov %s2490_s23 }
 0x2c8   : > { %s2497_s24 = sld [smem:[#allocation20_spill]]  ;;  %s2503_s18 = smov %s1691_s19 }
 0x2c9   : > { %s2504_s19 = smov %s2492_s11  ;;  %21 = sbr.rel (!%p2381_p1) target bundleno = 16 (0x10), region = 109 }
 0x2cd   : > { %s2505_s23 = smov %s2496_s5 }
 0x2ce   :  { %1132 = vsyncpa [#allocation4], 1 }
 0x2cf   :  { %1134 = vsyncpa [#allocation4 + $0x1], 1 }
 0x2d0   :  { %1135 = vsyncpa [#allocation7], 1 }
 0x2d1   :  { %1137 = vsyncpa [#allocation7 + $0x1], 1 }
 0x2d2   :  { %1138 = vsyncpa [#allocation5], 1 }
 0x2d3   :  { %1140 = vsyncpa [#allocation5 + $0x1], 1 }

</bundles_post_ra>
